<compile_context>
chip_gen: v7x
topology: tpu7x:2x2x1
jax: 0.10.0
libtpu: 0.0.40
codegen_flags: <defaults>
</compile_context>

<pallas_src>
import functools
import numpy as np

import jax
import jax.numpy as jnp
from jax.experimental import pallas as pl
from jax.experimental.pallas import tpu as pltpu


# ------------------------------ Pallas kernel ------------------------------ #

def _make_attn_layer_kernel(wb, N, C, head_dim, with_mask, add_residual):
    """One grid step = (one block of `wb` windows) x (one attention head)."""
    rows = wb * N

    def kernel(*refs):
        if with_mask:
            x_ref, mask_ref, wqkv_ref, bqkv_ref, wproj_ref, bproj_ref, o_ref = refs
        else:
            x_ref, wqkv_ref, bqkv_ref, wproj_ref, bproj_ref, o_ref = refs
            mask_ref = None

        h = pl.program_id(1)

        x = x_ref[...].reshape(rows, C)                 # (rows, C) f32, free leading merge
        xb = x.astype(jnp.bfloat16)

        # Per-head weights arrive pre-sliced via BlockSpec (no in-kernel lane slicing).
        wqkv = wqkv_ref[...]                            # (1, 3, C, hd) bf16 (scale folded in Q)
        bqkv = bqkv_ref[...]                            # (1, 3, 1, hd) f32
        wq, wk, wv = wqkv[0, 0], wqkv[0, 1], wqkv[0, 2]
        bq, bk, bv = bqkv[0, 0], bqkv[0, 1], bqkv[0, 2]

        q = (jnp.dot(xb, wq, preferred_element_type=jnp.float32) + bq).reshape(wb, N, head_dim)
        k = (jnp.dot(xb, wk, preferred_element_type=jnp.float32) + bk).reshape(wb, N, head_dim)
        v = (jnp.dot(xb, wv, preferred_element_type=jnp.float32) + bv).reshape(wb, N, head_dim)

        # Batched over all windows in the block; contraction over the last dim (no .T).
        logits = jnp.einsum("bnd,bmd->bnm",
                            q.astype(jnp.bfloat16), k.astype(jnp.bfloat16),
                            preferred_element_type=jnp.float32)           # (wb, N, N) f32
        if with_mask:
            logits = logits + mask_ref[...]                               # (wb, N, N)
        logits = logits - jnp.max(logits, axis=-1, keepdims=True)
        p = jnp.exp(logits)                                               # f32 (EUP)
        p = p * pl.reciprocal(jnp.sum(p, axis=-1, keepdims=True), approx=True)

        ctx = jnp.einsum("bnm,bmd->bnd",
                         p.astype(jnp.bfloat16), v.astype(jnp.bfloat16),
                         preferred_element_type=jnp.float32)              # (wb, N, hd)

        # Per-head output projection; summed over the head grid axis into the resident
        # output block (replaces the concat + full-width projection).
        part = jnp.dot(ctx.reshape(rows, head_dim).astype(jnp.bfloat16), wproj_ref[...][0],
                       preferred_element_type=jnp.float32)                # (rows, C) f32

        @pl.when(h == 0)
        def _():
            init = jnp.broadcast_to(bproj_ref[...], (rows, C))
            if add_residual:
                init = init + x                                           # module residual (f32)
            o_ref[...] = init.reshape(wb, N, C)

        o_ref[...] = o_ref[...] + part.reshape(wb, N, C)

    return kernel


def _attention_layer(x_rows, *, wqkv3, bqkv3, wproj3, bproj, mask, add_residual,
                     windows_per_block):
    """One windowed-attention layer: grid over (window blocks, heads)."""
    BW, N, C = x_rows.shape
    num_heads, _, _, head_dim = wqkv3.shape
    wb = windows_per_block
    assert BW % wb == 0
    grid = (BW // wb, num_heads)

    in_specs = [pl.BlockSpec((wb, N, C), lambda i, h: (i, 0, 0))]
    operands = [x_rows]
    if mask is not None:
        nW = mask.shape[0]
        assert nW % wb == 0
        mblocks = nW // wb
        in_specs.append(pl.BlockSpec((wb, N, N), lambda i, h: (i % mblocks, 0, 0)))
        operands.append(mask)
    # Weights: constant over the window axis, per-head slice over the head axis.
    in_specs += [
        pl.BlockSpec((1, 3, C, head_dim), lambda i, h: (h, 0, 0, 0)),
        pl.BlockSpec((1, 3, 1, head_dim), lambda i, h: (h, 0, 0, 0)),
        pl.BlockSpec((1, head_dim, C),    lambda i, h: (h, 0, 0)),
        pl.BlockSpec((1, C),              lambda i, h: (0, 0)),
    ]
    operands += [wqkv3, bqkv3, wproj3, bproj]

    kernel = _make_attn_layer_kernel(wb, N, C, head_dim,
                                     with_mask=mask is not None,
                                     add_residual=add_residual)
    return pl.pallas_call(
        kernel,
        grid=grid,
        in_specs=in_specs,
        out_specs=pl.BlockSpec((wb, N, C), lambda i, h: (i, 0, 0)),
        out_shape=jax.ShapeDtypeStruct((BW, N, C), jnp.float32),
        compiler_params=pltpu.CompilerParams(
            dimension_semantics=("parallel", "arbitrary"),
            vmem_limit_bytes=32 * 1024 * 1024),
    )(*operands)


# ----------------------------- host-side helpers ---------------------------- #

def _window_partition(x, ws):
    # x: (B, H, W, C) -> (B, nW, ws*ws, C)
    B, H, W, C = x.shape
    x = x.reshape(B, H // ws, ws, W // ws, ws, C)
    x = x.transpose(0, 1, 3, 2, 4, 5)
    return x.reshape(B, (H // ws) * (W // ws), ws * ws, C)


def _window_reverse(xw, ws, H, W):
    # xw: (B, nW, ws*ws, C) -> (B, H, W, C)
    B = xw.shape[0]
    C = xw.shape[-1]
    x = xw.reshape(B, H // ws, W // ws, ws, ws, C)
    x = x.transpose(0, 1, 3, 2, 4, 5)
    return x.reshape(B, H, W, C)


def _make_shift_mask(H, W, ws, shift):
    """Standard Swin shifted-window attention mask: (nW, N, N) with 0 / -100."""
    img_mask = np.zeros((1, H, W, 1), dtype=np.float32)
    cnt = 0
    for hs in (slice(0, -ws), slice(-ws, -shift), slice(-shift, None)):
        for wss in (slice(0, -ws), slice(-ws, -shift), slice(-shift, None)):
            img_mask[:, hs, wss, :] = cnt
            cnt += 1
    mw = _window_partition(jnp.asarray(img_mask), ws).reshape(-1, ws * ws)   # (nW, N)
    diff = mw[:, None, :] - mw[:, :, None]
    return jnp.where(diff != 0, -100.0, 0.0).astype(jnp.float32)             # (nW, N, N)


def prepare_layer_params(params, num_heads, head_dim, scale):
    """Fold the softmax scale into Q, split per head, cast matmul operands to bf16."""
    C = params["wproj"].shape[0]
    wqkv = params["wqkv"]                      # (C, 3C), columns = [q | k | v], head-major
    bqkv = params["bqkv"]                      # (1, 3C)
    scale_vec = jnp.concatenate([jnp.full((C,), scale, jnp.float32),
                                 jnp.ones((2 * C,), jnp.float32)])
    wqkv = wqkv * scale_vec[None, :]
    bqkv = bqkv * scale_vec[None, :]
    # (num_heads, 3, C, hd): per-head / per-matrix slices are delivered via BlockSpec.
    wqkv3 = wqkv.reshape(C, 3, num_heads, head_dim).transpose(2, 1, 0, 3)
    bqkv3 = bqkv.reshape(1, 3, num_heads, head_dim).transpose(2, 1, 0, 3)
    wproj3 = params["wproj"].reshape(num_heads, head_dim, C)
    return dict(
        wqkv3=wqkv3.astype(jnp.bfloat16),
        bqkv3=bqkv3.astype(jnp.float32),
        wproj3=wproj3.astype(jnp.bfloat16),
        bproj=params["bproj"].astype(jnp.float32),
    )


def swin_attention_module(x_nchw, attn_p, swattn_p, *, window_size, shift, shift_mask,
                          windows_per_block=None):
    """Forward of SwinAttntion_:  SW_MSA( x + W_MSA(x) )."""
    B, C, H, W = x_nchw.shape
    ws = window_size
    N = ws * ws
    nW = (H // ws) * (W // ws)
    BW = B * nW
    wb = nW if windows_per_block is None else windows_per_block

    x = jnp.transpose(x_nchw, (0, 2, 3, 1))                      # NHWC
    xw = _window_partition(x, ws).reshape(BW, N, C)              # un-shifted window rows

    # ---- layer 1: W-MSA, residual fused in-kernel (z = x + attn(x)), no mask ----
    z = _attention_layer(xw, mask=None, add_residual=True,
                         windows_per_block=wb, **attn_p)

    # ---- inter-layer shifted re-windowing: O(R*C) cyclic roll + re-partition ----
    z_img = _window_reverse(z.reshape(B, nW, N, C), ws, H, W)
    z_img = jnp.roll(z_img, shift=(-shift, -shift), axis=(1, 2))
    zw = _window_partition(z_img, ws).reshape(BW, N, C)

    # ---- layer 2: SW-MSA with additive -100 shift mask ----
    y = _attention_layer(zw, mask=shift_mask, add_residual=False,
                         windows_per_block=wb, **swattn_p)

    y_img = _window_reverse(y.reshape(B, nW, N, C), ws, H, W)
    y_img = jnp.roll(y_img, shift=(shift, shift), axis=(1, 2))
    return jnp.transpose(y_img, (0, 3, 1, 2))                    # back to NCHW


# --------------------------- pure-JAX reference ----------------------------- #

def _ref_window_attention(x_nchw, params, *, window_size, shift, num_heads, head_dim, mask):
    B, C, H, W = x_nchw.shape
    ws = window_size
    N = ws * ws
    scale = head_dim ** -0.5
    x = jnp.transpose(x_nchw, (0, 2, 3, 1))
    if shift > 0:
        x = jnp.roll(x, shift=(-shift, -shift), axis=(1, 2))
    xw = _window_partition(x, ws)                                        # (B, nW, N, C)
    qkv = xw @ params["wqkv"] + params["bqkv"][0]
    q, k, v = qkv[..., :C], qkv[..., C:2 * C], qkv[..., 2 * C:]
    rh = lambda t: t.reshape(B, -1, N, num_heads, head_dim).transpose(0, 1, 3, 2, 4)
    q, k, v = rh(q) * scale, rh(k), rh(v)
    logits = jnp.einsum("bwhnd,bwhmd->bwhnm", q, k) + mask[None, :, None]
    p = jax.nn.softmax(logits, axis=-1)
    o = jnp.einsum("bwhnm,bwhmd->bwhnd", p, v).transpose(0, 1, 3, 2, 4).reshape(B, -1, N, C)
    o = o @ params["wproj"] + params["bproj"][0]
    x = _window_reverse(o, ws, H, W)
    if shift > 0:
        x = jnp.roll(x, shift=(shift, shift), axis=(1, 2))
    return jnp.transpose(x, (0, 3, 1, 2))


# ---------------------------------- main ------------------------------------ #

if __name__ == "__main__":
    # Small, module-consistent shapes.
    B, C, H, W = 2, 32, 8, 8
    num_heads = 4
    head_dim = C // num_heads
    window_num = 2
    window_size = H // window_num              # 4
    shift = window_size // 2                   # 2
    N = window_size * window_size              # 16
    nW = (H // window_size) * (W // window_size)   # 4
    scale = head_dim ** -0.5

    key = jax.random.PRNGKey(0)
    ks = jax.random.split(key, 9)

    def init_params(k0, k1, k2, k3):
        s = 0.05
        return {
            "wqkv": jax.random.normal(k0, (C, 3 * C), jnp.float32) * s,
            "bqkv": jax.random.normal(k1, (1, 3 * C), jnp.float32) * s,
            "wproj": jax.random.normal(k2, (C, C), jnp.float32) * s,
            "bproj": jax.random.normal(k3, (1, C), jnp.float32) * s,
        }

    attn_params = init_params(*ks[0:4])
    swattn_params = init_params(*ks[4:8])
    x = jax.random.normal(ks[8], (B, C, H, W), jnp.float32)

    shift_mask = _make_shift_mask(H, W, window_size, shift)          # (nW, N, N)

    attn_k = prepare_layer_params(attn_params, num_heads, head_dim, scale)
    swattn_k = prepare_layer_params(swattn_params, num_heads, head_dim, scale)

    fwd = jax.jit(functools.partial(
        swin_attention_module,
        window_size=window_size, shift=shift, shift_mask=shift_mask))

    out = jax.block_until_ready(fwd(x, attn_k, swattn_k))

    # Cross-check against a pure-JAX f32 reference of the same math (un-fused formulation).
    zero_mask = jnp.zeros((nW, N, N), jnp.float32)

    def ref_fwd(xx):
        y = _ref_window_attention(xx, attn_params, window_size=window_size, shift=0,
                                  num_heads=num_heads, head_dim=head_dim, mask=zero_mask)
        return _ref_window_attention(xx + y, swattn_params, window_size=window_size,
                                     shift=shift, num_heads=num_heads,
                                     head_dim=head_dim, mask=shift_mask)

    ref = jax.block_until_ready(ref_fwd(x))

    assert out.shape == (B, C, H, W)
    assert bool(jnp.all(jnp.isfinite(out)))
    assert bool(jnp.allclose(out, ref, atol=2e-2, rtol=2e-2))

    print("KERNEL_OK")
</pallas_src>

<mosaic_0001>
module attributes {stable_mosaic.version = 11 : i64} {
  func.func @kernel(%arg0: i32, %arg1: i32, %arg2: memref<4x16x32xf32, #tpu.memory_space<vmem>>, %arg3: memref<1x3x32x8xbf16, #tpu.memory_space<vmem>>, %arg4: memref<1x3x1x8xf32, #tpu.memory_space<vmem>>, %arg5: memref<1x8x32xbf16, #tpu.memory_space<vmem>>, %arg6: memref<1x32xf32, #tpu.memory_space<vmem>>, %arg7: memref<4x16x32xf32, #tpu.memory_space<vmem>>) attributes {dimension_semantics = [#tpu.dimension_semantics<parallel>, #tpu.dimension_semantics<arbitrary>], iteration_bounds = array<i64: 2, 4>, scalar_prefetch = 0 : i64, scratch_operands = 0 : i64, tpu.core_type = #tpu.core_type<tc>, window_params = [{transform_indices = @transform_0, window_bounds = array<i64: 4, 16, 32>}, {transform_indices = @transform_1, window_bounds = array<i64: 1, 3, 32, 8>}, {transform_indices = @transform_2, window_bounds = array<i64: 1, 3, 1, 8>}, {transform_indices = @transform_3, window_bounds = array<i64: 1, 8, 32>}, {pipeline_mode = #tpu.pipeline_mode<synchronous>, transform_indices = @transform_4, window_bounds = array<i64: 1, 32>}, {transform_indices = @transform_5, window_bounds = array<i64: 4, 16, 32>}]} {
    %c0 = arith.constant 0 : index
    %c0_0 = arith.constant 0 : index
    %c0_1 = arith.constant 0 : index
    %0 = vector.load %arg2[%c0, %c0_0, %c0_1] : memref<4x16x32xf32, #tpu.memory_space<vmem>>, vector<4x16x32xf32>
    %1 = vector.shape_cast %0 : vector<4x16x32xf32> to vector<64x32xf32>
    %2 = arith.truncf %1 : vector<64x32xf32> to vector<64x32xbf16>
    %c0_2 = arith.constant 0 : index
    %c0_3 = arith.constant 0 : index
    %c0_4 = arith.constant 0 : index
    %c0_5 = arith.constant 0 : index
    %3 = vector.load %arg3[%c0_2, %c0_3, %c0_4, %c0_5] : memref<1x3x32x8xbf16, #tpu.memory_space<vmem>>, vector<1x3x32x8xbf16>
    %c0_6 = arith.constant 0 : index
    %c0_7 = arith.constant 0 : index
    %c0_8 = arith.constant 0 : index
    %c0_9 = arith.constant 0 : index
    %4 = vector.load %arg4[%c0_6, %c0_7, %c0_8, %c0_9] : memref<1x3x1x8xf32, #tpu.memory_space<vmem>>, vector<1x3x1x8xf32>
    %5 = vector.extract_strided_slice %3 {offsets = [0, 0, 0, 0], sizes = [1, 1, 32, 8], strides = [1, 1, 1, 1]} : vector<1x3x32x8xbf16> to vector<1x1x32x8xbf16>
    %6 = vector.shape_cast %5 : vector<1x1x32x8xbf16> to vector<32x8xbf16>
    %7 = vector.extract_strided_slice %3 {offsets = [0, 1, 0, 0], sizes = [1, 1, 32, 8], strides = [1, 1, 1, 1]} : vector<1x3x32x8xbf16> to vector<1x1x32x8xbf16>
    %8 = vector.shape_cast %7 : vector<1x1x32x8xbf16> to vector<32x8xbf16>
    %9 = vector.extract_strided_slice %3 {offsets = [0, 2, 0, 0], sizes = [1, 1, 32, 8], strides = [1, 1, 1, 1]} : vector<1x3x32x8xbf16> to vector<1x1x32x8xbf16>
    %10 = vector.shape_cast %9 : vector<1x1x32x8xbf16> to vector<32x8xbf16>
    %11 = vector.extract_strided_slice %4 {offsets = [0, 0, 0, 0], sizes = [1, 1, 1, 8], strides = [1, 1, 1, 1]} : vector<1x3x1x8xf32> to vector<1x1x1x8xf32>
    %12 = vector.shape_cast %11 : vector<1x1x1x8xf32> to vector<1x8xf32>
    %13 = vector.extract_strided_slice %4 {offsets = [0, 1, 0, 0], sizes = [1, 1, 1, 8], strides = [1, 1, 1, 1]} : vector<1x3x1x8xf32> to vector<1x1x1x8xf32>
    %14 = vector.shape_cast %13 : vector<1x1x1x8xf32> to vector<1x8xf32>
    %15 = vector.extract_strided_slice %4 {offsets = [0, 2, 0, 0], sizes = [1, 1, 1, 8], strides = [1, 1, 1, 1]} : vector<1x3x1x8xf32> to vector<1x1x1x8xf32>
    %16 = vector.shape_cast %15 : vector<1x1x1x8xf32> to vector<1x8xf32>
    %cst = arith.constant dense<0.000000e+00> : vector<64x8xf32>
    %17 = tpu.matmul %2, %6, %cst {dimension_numbers = #tpu.dot_dimension_numbers<[1], [0], [0], [1], [0, 0, 1, 1], [], []>} : vector<64x32xbf16>, vector<32x8xbf16>, vector<64x8xf32> -> vector<64x8xf32>
    %18 = vector.broadcast %12 : vector<1x8xf32> to vector<64x8xf32>
    %19 = arith.addf %17, %18 : vector<64x8xf32>
    %20 = vector.shape_cast %19 : vector<64x8xf32> to vector<4x16x8xf32>
    %cst_10 = arith.constant dense<0.000000e+00> : vector<64x8xf32>
    %21 = tpu.matmul %2, %8, %cst_10 {dimension_numbers = #tpu.dot_dimension_numbers<[1], [0], [0], [1], [0, 0, 1, 1], [], []>} : vector<64x32xbf16>, vector<32x8xbf16>, vector<64x8xf32> -> vector<64x8xf32>
    %22 = vector.broadcast %14 : vector<1x8xf32> to vector<64x8xf32>
    %23 = arith.addf %21, %22 : vector<64x8xf32>
    %24 = vector.shape_cast %23 : vector<64x8xf32> to vector<4x16x8xf32>
    %cst_11 = arith.constant dense<0.000000e+00> : vector<64x8xf32>
    %25 = tpu.matmul %2, %10, %cst_11 {dimension_numbers = #tpu.dot_dimension_numbers<[1], [0], [0], [1], [0, 0, 1, 1], [], []>} : vector<64x32xbf16>, vector<32x8xbf16>, vector<64x8xf32> -> vector<64x8xf32>
    %26 = vector.broadcast %16 : vector<1x8xf32> to vector<64x8xf32>
    %27 = arith.addf %25, %26 : vector<64x8xf32>
    %28 = vector.shape_cast %27 : vector<64x8xf32> to vector<4x16x8xf32>
    %29 = arith.truncf %20 : vector<4x16x8xf32> to vector<4x16x8xbf16>
    %30 = arith.truncf %24 : vector<4x16x8xf32> to vector<4x16x8xbf16>
    "tpu.trace_start"() <{level = 10 : i32, message = "bnd,bmd->bnm"}> : () -> ()
    %cst_12 = arith.constant dense<0.000000e+00> : vector<4x16x16xf32>
    %31 = tpu.matmul %29, %30, %cst_12 {dimension_numbers = #tpu.dot_dimension_numbers<[2], [2], [1], [1], [0, 0, 0, 1, 1, 1], [0], [0]>} : vector<4x16x8xbf16>, vector<4x16x8xbf16>, vector<4x16x16xf32> -> vector<4x16x16xf32>
    "tpu.trace_stop"() : () -> ()
    %cst_13 = arith.constant dense<0xFF800000> : vector<4x16xf32>
    %32 = vector.multi_reduction <maximumf>, %31, %cst_13 [2] : vector<4x16x16xf32> to vector<4x16xf32>
    %33 = vector.shape_cast %32 : vector<4x16xf32> to vector<4x16x1xf32>
    %34 = vector.broadcast %33 : vector<4x16x1xf32> to vector<4x16x16xf32>
    %35 = arith.subf %31, %34 : vector<4x16x16xf32>
    %36 = math.exp %35 : vector<4x16x16xf32>
    %cst_14 = arith.constant dense<0.000000e+00> : vector<4x16xf32>
    %37 = vector.multi_reduction <add>, %36, %cst_14 [2] : vector<4x16x16xf32> to vector<4x16xf32>
    %38 = vector.shape_cast %37 : vector<4x16xf32> to vector<4x16x1xf32>
    %39 = tpu.reciprocal %38 {approx = true} : vector<4x16x1xf32> -> vector<4x16x1xf32>
    %40 = vector.broadcast %39 : vector<4x16x1xf32> to vector<4x16x16xf32>
    %41 = arith.mulf %36, %40 : vector<4x16x16xf32>
    %42 = arith.truncf %41 : vector<4x16x16xf32> to vector<4x16x16xbf16>
    %43 = arith.truncf %28 : vector<4x16x8xf32> to vector<4x16x8xbf16>
    "tpu.trace_start"() <{level = 10 : i32, message = "bnm,bmd->bnd"}> : () -> ()
    %cst_15 = arith.constant dense<0.000000e+00> : vector<4x16x8xf32>
    %44 = tpu.matmul %42, %43, %cst_15 {dimension_numbers = #tpu.dot_dimension_numbers<[2], [1], [1], [2], [0, 0, 0, 1, 1, 2], [0], [0]>} : vector<4x16x16xbf16>, vector<4x16x8xbf16>, vector<4x16x8xf32> -> vector<4x16x8xf32>
    "tpu.trace_stop"() : () -> ()
    %45 = vector.shape_cast %44 : vector<4x16x8xf32> to vector<64x8xf32>
    %46 = arith.truncf %45 : vector<64x8xf32> to vector<64x8xbf16>
    %c0_16 = arith.constant 0 : index
    %c0_17 = arith.constant 0 : index
    %c0_18 = arith.constant 0 : index
    %47 = vector.load %arg5[%c0_16, %c0_17, %c0_18] : memref<1x8x32xbf16, #tpu.memory_space<vmem>>, vector<1x8x32xbf16>
    %48 = vector.shape_cast %47 : vector<1x8x32xbf16> to vector<8x32xbf16>
    %cst_19 = arith.constant dense<0.000000e+00> : vector<64x32xf32>
    %49 = tpu.matmul %46, %48, %cst_19 {dimension_numbers = #tpu.dot_dimension_numbers<[1], [0], [0], [1], [0, 0, 1, 1], [], []>} : vector<64x8xbf16>, vector<8x32xbf16>, vector<64x32xf32> -> vector<64x32xf32>
    %c0_i32 = arith.constant 0 : i32
    %50 = arith.cmpi eq, %arg1, %c0_i32 : i32
    %51 = arith.extui %50 : i1 to i32
    %c0_i32_20 = arith.constant 0 : i32
    %52 = arith.cmpi ne, %51, %c0_i32_20 : i32
    scf.if %52 {
      %c0_27 = arith.constant 0 : index
      %c0_28 = arith.constant 0 : index
      %57 = vector.load %arg6[%c0_27, %c0_28] : memref<1x32xf32, #tpu.memory_space<vmem>>, vector<1x32xf32>
      %58 = vector.shape_cast %57 : vector<1x32xf32> to vector<1x32xf32>
      %59 = vector.broadcast %58 : vector<1x32xf32> to vector<64x32xf32>
      %60 = arith.addf %59, %1 : vector<64x32xf32>
      %61 = vector.shape_cast %60 : vector<64x32xf32> to vector<4x16x32xf32>
      %c0_29 = arith.constant 0 : index
      %c0_30 = arith.constant 0 : index
      %c0_31 = arith.constant 0 : index
      %62 = vector.load %arg7[%c0_29, %c0_30, %c0_31] : memref<4x16x32xf32, #tpu.memory_space<vmem>>, vector<4x16x32xf32>
      tpu.vector_store %arg7[%c0_29, %c0_30, %c0_31], %61 {strides = array<i32>} : memref<4x16x32xf32, #tpu.memory_space<vmem>>, vector<4x16x32xf32>,
    } else {
    }
    %c0_21 = arith.constant 0 : index
    %c0_22 = arith.constant 0 : index
    %c0_23 = arith.constant 0 : index
    %53 = vector.load %arg7[%c0_21, %c0_22, %c0_23] : memref<4x16x32xf32, #tpu.memory_space<vmem>>, vector<4x16x32xf32>
    %54 = vector.shape_cast %49 : vector<64x32xf32> to vector<4x16x32xf32>
    %55 = arith.addf %53, %54 : vector<4x16x32xf32>
    %c0_24 = arith.constant 0 : index
    %c0_25 = arith.constant 0 : index
    %c0_26 = arith.constant 0 : index
    %56 = vector.load %arg7[%c0_24, %c0_25, %c0_26] : memref<4x16x32xf32, #tpu.memory_space<vmem>>, vector<4x16x32xf32>
    tpu.vector_store %arg7[%c0_24, %c0_25, %c0_26], %55 {strides = array<i32>} : memref<4x16x32xf32, #tpu.memory_space<vmem>>, vector<4x16x32xf32>,
    return
  }
  func.func @transform_0(%arg0: i32, %arg1: i32) -> (i32, i32, i32) {
    %c0_i32 = arith.constant 0 : i32
    %c0_i32_0 = arith.constant 0 : i32
    %c0_i32_1 = arith.constant 0 : i32
    return %arg0, %c0_i32, %c0_i32_0 : i32, i32, i32
  }
  func.func @transform_1(%arg0: i32, %arg1: i32) -> (i32, i32, i32, i32) {
    %c0_i32 = arith.constant 0 : i32
    %c0_i32_0 = arith.constant 0 : i32
    %c0_i32_1 = arith.constant 0 : i32
    %c0_i32_2 = arith.constant 0 : i32
    return %arg1, %c0_i32, %c0_i32_0, %c0_i32_1 : i32, i32, i32, i32
  }
  func.func @transform_2(%arg0: i32, %arg1: i32) -> (i32, i32, i32, i32) {
    %c0_i32 = arith.constant 0 : i32
    %c0_i32_0 = arith.constant 0 : i32
    %c0_i32_1 = arith.constant 0 : i32
    %c0_i32_2 = arith.constant 0 : i32
    return %arg1, %c0_i32, %c0_i32_0, %c0_i32_1 : i32, i32, i32, i32
  }
  func.func @transform_3(%arg0: i32, %arg1: i32) -> (i32, i32, i32) {
    %c0_i32 = arith.constant 0 : i32
    %c0_i32_0 = arith.constant 0 : i32
    %c0_i32_1 = arith.constant 0 : i32
    return %arg1, %c0_i32, %c0_i32_0 : i32, i32, i32
  }
  func.func @transform_4(%arg0: i32, %arg1: i32) -> (i32, i32) {
    %c0_i32 = arith.constant 0 : i32
    %c0_i32_0 = arith.constant 0 : i32
    %c0_i32_1 = arith.constant 0 : i32
    return %c0_i32, %c0_i32_0 : i32, i32
  }
  func.func @transform_5(%arg0: i32, %arg1: i32) -> (i32, i32, i32) {
    %c0_i32 = arith.constant 0 : i32
    %c0_i32_0 = arith.constant 0 : i32
    %c0_i32_1 = arith.constant 0 : i32
    return %arg0, %c0_i32, %c0_i32_0 : i32, i32, i32
  }
}

module attributes {stable_mosaic.version = 11 : i64} {
  func.func @kernel(%arg0: i32, %arg1: i32, %arg2: memref<4x16x32xf32, #tpu.memory_space<vmem>>, %arg3: memref<4x16x16xf32, #tpu.memory_space<vmem>>, %arg4: memref<1x3x32x8xbf16, #tpu.memory_space<vmem>>, %arg5: memref<1x3x1x8xf32, #tpu.memory_space<vmem>>, %arg6: memref<1x8x32xbf16, #tpu.memory_space<vmem>>, %arg7: memref<1x32xf32, #tpu.memory_space<vmem>>, %arg8: memref<4x16x32xf32, #tpu.memory_space<vmem>>) attributes {dimension_semantics = [#tpu.dimension_semantics<parallel>, #tpu.dimension_semantics<arbitrary>], iteration_bounds = array<i64: 2, 4>, scalar_prefetch = 0 : i64, scratch_operands = 0 : i64, tpu.core_type = #tpu.core_type<tc>, window_params = [{transform_indices = @transform_0, window_bounds = array<i64: 4, 16, 32>}, {transform_indices = @transform_1, window_bounds = array<i64: 4, 16, 16>}, {transform_indices = @transform_2, window_bounds = array<i64: 1, 3, 32, 8>}, {transform_indices = @transform_3, window_bounds = array<i64: 1, 3, 1, 8>}, {transform_indices = @transform_4, window_bounds = array<i64: 1, 8, 32>}, {pipeline_mode = #tpu.pipeline_mode<synchronous>, transform_indices = @transform_5, window_bounds = array<i64: 1, 32>}, {transform_indices = @transform_6, window_bounds = array<i64: 4, 16, 32>}]} {
    %c0 = arith.constant 0 : index
    %c0_0 = arith.constant 0 : index
    %c0_1 = arith.constant 0 : index
    %0 = vector.load %arg2[%c0, %c0_0, %c0_1] : memref<4x16x32xf32, #tpu.memory_space<vmem>>, vector<4x16x32xf32>
    %1 = vector.shape_cast %0 : vector<4x16x32xf32> to vector<64x32xf32>
    %2 = arith.truncf %1 : vector<64x32xf32> to vector<64x32xbf16>
    %c0_2 = arith.constant 0 : index
    %c0_3 = arith.constant 0 : index
    %c0_4 = arith.constant 0 : index
    %c0_5 = arith.constant 0 : index
    %3 = vector.load %arg4[%c0_2, %c0_3, %c0_4, %c0_5] : memref<1x3x32x8xbf16, #tpu.memory_space<vmem>>, vector<1x3x32x8xbf16>
    %c0_6 = arith.constant 0 : index
    %c0_7 = arith.constant 0 : index
    %c0_8 = arith.constant 0 : index
    %c0_9 = arith.constant 0 : index
    %4 = vector.load %arg5[%c0_6, %c0_7, %c0_8, %c0_9] : memref<1x3x1x8xf32, #tpu.memory_space<vmem>>, vector<1x3x1x8xf32>
    %5 = vector.extract_strided_slice %3 {offsets = [0, 0, 0, 0], sizes = [1, 1, 32, 8], strides = [1, 1, 1, 1]} : vector<1x3x32x8xbf16> to vector<1x1x32x8xbf16>
    %6 = vector.shape_cast %5 : vector<1x1x32x8xbf16> to vector<32x8xbf16>
    %7 = vector.extract_strided_slice %3 {offsets = [0, 1, 0, 0], sizes = [1, 1, 32, 8], strides = [1, 1, 1, 1]} : vector<1x3x32x8xbf16> to vector<1x1x32x8xbf16>
    %8 = vector.shape_cast %7 : vector<1x1x32x8xbf16> to vector<32x8xbf16>
    %9 = vector.extract_strided_slice %3 {offsets = [0, 2, 0, 0], sizes = [1, 1, 32, 8], strides = [1, 1, 1, 1]} : vector<1x3x32x8xbf16> to vector<1x1x32x8xbf16>
    %10 = vector.shape_cast %9 : vector<1x1x32x8xbf16> to vector<32x8xbf16>
    %11 = vector.extract_strided_slice %4 {offsets = [0, 0, 0, 0], sizes = [1, 1, 1, 8], strides = [1, 1, 1, 1]} : vector<1x3x1x8xf32> to vector<1x1x1x8xf32>
    %12 = vector.shape_cast %11 : vector<1x1x1x8xf32> to vector<1x8xf32>
    %13 = vector.extract_strided_slice %4 {offsets = [0, 1, 0, 0], sizes = [1, 1, 1, 8], strides = [1, 1, 1, 1]} : vector<1x3x1x8xf32> to vector<1x1x1x8xf32>
    %14 = vector.shape_cast %13 : vector<1x1x1x8xf32> to vector<1x8xf32>
    %15 = vector.extract_strided_slice %4 {offsets = [0, 2, 0, 0], sizes = [1, 1, 1, 8], strides = [1, 1, 1, 1]} : vector<1x3x1x8xf32> to vector<1x1x1x8xf32>
    %16 = vector.shape_cast %15 : vector<1x1x1x8xf32> to vector<1x8xf32>
    %cst = arith.constant dense<0.000000e+00> : vector<64x8xf32>
    %17 = tpu.matmul %2, %6, %cst {dimension_numbers = #tpu.dot_dimension_numbers<[1], [0], [0], [1], [0, 0, 1, 1], [], []>} : vector<64x32xbf16>, vector<32x8xbf16>, vector<64x8xf32> -> vector<64x8xf32>
    %18 = vector.broadcast %12 : vector<1x8xf32> to vector<64x8xf32>
    %19 = arith.addf %17, %18 : vector<64x8xf32>
    %20 = vector.shape_cast %19 : vector<64x8xf32> to vector<4x16x8xf32>
    %cst_10 = arith.constant dense<0.000000e+00> : vector<64x8xf32>
    %21 = tpu.matmul %2, %8, %cst_10 {dimension_numbers = #tpu.dot_dimension_numbers<[1], [0], [0], [1], [0, 0, 1, 1], [], []>} : vector<64x32xbf16>, vector<32x8xbf16>, vector<64x8xf32> -> vector<64x8xf32>
    %22 = vector.broadcast %14 : vector<1x8xf32> to vector<64x8xf32>
    %23 = arith.addf %21, %22 : vector<64x8xf32>
    %24 = vector.shape_cast %23 : vector<64x8xf32> to vector<4x16x8xf32>
    %cst_11 = arith.constant dense<0.000000e+00> : vector<64x8xf32>
    %25 = tpu.matmul %2, %10, %cst_11 {dimension_numbers = #tpu.dot_dimension_numbers<[1], [0], [0], [1], [0, 0, 1, 1], [], []>} : vector<64x32xbf16>, vector<32x8xbf16>, vector<64x8xf32> -> vector<64x8xf32>
    %26 = vector.broadcast %16 : vector<1x8xf32> to vector<64x8xf32>
    %27 = arith.addf %25, %26 : vector<64x8xf32>
    %28 = vector.shape_cast %27 : vector<64x8xf32> to vector<4x16x8xf32>
    %29 = arith.truncf %20 : vector<4x16x8xf32> to vector<4x16x8xbf16>
    %30 = arith.truncf %24 : vector<4x16x8xf32> to vector<4x16x8xbf16>
    "tpu.trace_start"() <{level = 10 : i32, message = "bnd,bmd->bnm"}> : () -> ()
    %cst_12 = arith.constant dense<0.000000e+00> : vector<4x16x16xf32>
    %31 = tpu.matmul %29, %30, %cst_12 {dimension_numbers = #tpu.dot_dimension_numbers<[2], [2], [1], [1], [0, 0, 0, 1, 1, 1], [0], [0]>} : vector<4x16x8xbf16>, vector<4x16x8xbf16>, vector<4x16x16xf32> -> vector<4x16x16xf32>
    "tpu.trace_stop"() : () -> ()
    %c0_13 = arith.constant 0 : index
    %c0_14 = arith.constant 0 : index
    %c0_15 = arith.constant 0 : index
    %32 = vector.load %arg3[%c0_13, %c0_14, %c0_15] : memref<4x16x16xf32, #tpu.memory_space<vmem>>, vector<4x16x16xf32>
    %33 = arith.addf %31, %32 : vector<4x16x16xf32>
    %cst_16 = arith.constant dense<0xFF800000> : vector<4x16xf32>
    %34 = vector.multi_reduction <maximumf>, %33, %cst_16 [2] : vector<4x16x16xf32> to vector<4x16xf32>
    %35 = vector.shape_cast %34 : vector<4x16xf32> to vector<4x16x1xf32>
    %36 = vector.broadcast %35 : vector<4x16x1xf32> to vector<4x16x16xf32>
    %37 = arith.subf %33, %36 : vector<4x16x16xf32>
    %38 = math.exp %37 : vector<4x16x16xf32>
    %cst_17 = arith.constant dense<0.000000e+00> : vector<4x16xf32>
    %39 = vector.multi_reduction <add>, %38, %cst_17 [2] : vector<4x16x16xf32> to vector<4x16xf32>
    %40 = vector.shape_cast %39 : vector<4x16xf32> to vector<4x16x1xf32>
    %41 = tpu.reciprocal %40 {approx = true} : vector<4x16x1xf32> -> vector<4x16x1xf32>
    %42 = vector.broadcast %41 : vector<4x16x1xf32> to vector<4x16x16xf32>
    %43 = arith.mulf %38, %42 : vector<4x16x16xf32>
    %44 = arith.truncf %43 : vector<4x16x16xf32> to vector<4x16x16xbf16>
    %45 = arith.truncf %28 : vector<4x16x8xf32> to vector<4x16x8xbf16>
    "tpu.trace_start"() <{level = 10 : i32, message = "bnm,bmd->bnd"}> : () -> ()
    %cst_18 = arith.constant dense<0.000000e+00> : vector<4x16x8xf32>
    %46 = tpu.matmul %44, %45, %cst_18 {dimension_numbers = #tpu.dot_dimension_numbers<[2], [1], [1], [2], [0, 0, 0, 1, 1, 2], [0], [0]>} : vector<4x16x16xbf16>, vector<4x16x8xbf16>, vector<4x16x8xf32> -> vector<4x16x8xf32>
    "tpu.trace_stop"() : () -> ()
    %47 = vector.shape_cast %46 : vector<4x16x8xf32> to vector<64x8xf32>
    %48 = arith.truncf %47 : vector<64x8xf32> to vector<64x8xbf16>
    %c0_19 = arith.constant 0 : index
    %c0_20 = arith.constant 0 : index
    %c0_21 = arith.constant 0 : index
    %49 = vector.load %arg6[%c0_19, %c0_20, %c0_21] : memref<1x8x32xbf16, #tpu.memory_space<vmem>>, vector<1x8x32xbf16>
    %50 = vector.shape_cast %49 : vector<1x8x32xbf16> to vector<8x32xbf16>
    %cst_22 = arith.constant dense<0.000000e+00> : vector<64x32xf32>
    %51 = tpu.matmul %48, %50, %cst_22 {dimension_numbers = #tpu.dot_dimension_numbers<[1], [0], [0], [1], [0, 0, 1, 1], [], []>} : vector<64x8xbf16>, vector<8x32xbf16>, vector<64x32xf32> -> vector<64x32xf32>
    %c0_i32 = arith.constant 0 : i32
    %52 = arith.cmpi eq, %arg1, %c0_i32 : i32
    %53 = arith.extui %52 : i1 to i32
    %c0_i32_23 = arith.constant 0 : i32
    %54 = arith.cmpi ne, %53, %c0_i32_23 : i32
    scf.if %54 {
      %c0_30 = arith.constant 0 : index
      %c0_31 = arith.constant 0 : index
      %59 = vector.load %arg7[%c0_30, %c0_31] : memref<1x32xf32, #tpu.memory_space<vmem>>, vector<1x32xf32>
      %60 = vector.shape_cast %59 : vector<1x32xf32> to vector<1x32xf32>
      %61 = vector.broadcast %60 : vector<1x32xf32> to vector<64x32xf32>
      %62 = vector.shape_cast %61 : vector<64x32xf32> to vector<4x16x32xf32>
      %c0_32 = arith.constant 0 : index
      %c0_33 = arith.constant 0 : index
      %c0_34 = arith.constant 0 : index
      %63 = vector.load %arg8[%c0_32, %c0_33, %c0_34] : memref<4x16x32xf32, #tpu.memory_space<vmem>>, vector<4x16x32xf32>
      tpu.vector_store %arg8[%c0_32, %c0_33, %c0_34], %62 {strides = array<i32>} : memref<4x16x32xf32, #tpu.memory_space<vmem>>, vector<4x16x32xf32>,
    } else {
    }
    %c0_24 = arith.constant 0 : index
    %c0_25 = arith.constant 0 : index
    %c0_26 = arith.constant 0 : index
    %55 = vector.load %arg8[%c0_24, %c0_25, %c0_26] : memref<4x16x32xf32, #tpu.memory_space<vmem>>, vector<4x16x32xf32>
    %56 = vector.shape_cast %51 : vector<64x32xf32> to vector<4x16x32xf32>
    %57 = arith.addf %55, %56 : vector<4x16x32xf32>
    %c0_27 = arith.constant 0 : index
    %c0_28 = arith.constant 0 : index
    %c0_29 = arith.constant 0 : index
    %58 = vector.load %arg8[%c0_27, %c0_28, %c0_29] : memref<4x16x32xf32, #tpu.memory_space<vmem>>, vector<4x16x32xf32>
    tpu.vector_store %arg8[%c0_27, %c0_28, %c0_29], %57 {strides = array<i32>} : memref<4x16x32xf32, #tpu.memory_space<vmem>>, vector<4x16x32xf32>,
    return
  }
  func.func @transform_0(%arg0: i32, %arg1: i32) -> (i32, i32, i32) {
    %c0_i32 = arith.constant 0 : i32
    %c0_i32_0 = arith.constant 0 : i32
    %c0_i32_1 = arith.constant 0 : i32
    return %arg0, %c0_i32, %c0_i32_0 : i32, i32, i32
  }
  func.func @transform_1(%arg0: i32, %arg1: i32) -> (i32, i32, i32) {
    %c1_i32 = arith.constant 1 : i32
    %c0_i32 = arith.constant 0 : i32
    %0 = arith.cmpi eq, %c1_i32, %c0_i32 : i32
    %c1_i32_0 = arith.constant 1 : i32
    %1 = arith.select %0, %c1_i32_0, %c1_i32 : i32
    %2 = arith.remsi %arg0, %1 : i32
    %c0_i32_1 = arith.constant 0 : i32
    %3 = arith.cmpi ne, %2, %c0_i32_1 : i32
    %c0_i32_2 = arith.constant 0 : i32
    %4 = arith.cmpi slt, %2, %c0_i32_2 : i32
    %c0_i32_3 = arith.constant 0 : i32
    %5 = arith.cmpi slt, %1, %c0_i32_3 : i32
    %6 = arith.xori %4, %5 : i1
    %7 = arith.andi %6, %3 : i1
    %8 = arith.addi %2, %1 : i32
    %9 = arith.select %7, %8, %2 : i32
    %c0_i32_4 = arith.constant 0 : i32
    %c0_i32_5 = arith.constant 0 : i32
    %c0_i32_6 = arith.constant 0 : i32
    return %9, %c0_i32_4, %c0_i32_5 : i32, i32, i32
  }
  func.func @transform_2(%arg0: i32, %arg1: i32) -> (i32, i32, i32, i32) {
    %c0_i32 = arith.constant 0 : i32
    %c0_i32_0 = arith.constant 0 : i32
    %c0_i32_1 = arith.constant 0 : i32
    %c0_i32_2 = arith.constant 0 : i32
    return %arg1, %c0_i32, %c0_i32_0, %c0_i32_1 : i32, i32, i32, i32
  }
  func.func @transform_3(%arg0: i32, %arg1: i32) -> (i32, i32, i32, i32) {
    %c0_i32 = arith.constant 0 : i32
    %c0_i32_0 = arith.constant 0 : i32
    %c0_i32_1 = arith.constant 0 : i32
    %c0_i32_2 = arith.constant 0 : i32
    return %arg1, %c0_i32, %c0_i32_0, %c0_i32_1 : i32, i32, i32, i32
  }
  func.func @transform_4(%arg0: i32, %arg1: i32) -> (i32, i32, i32) {
    %c0_i32 = arith.constant 0 : i32
    %c0_i32_0 = arith.constant 0 : i32
    %c0_i32_1 = arith.constant 0 : i32
    return %arg1, %c0_i32, %c0_i32_0 : i32, i32, i32
  }
  func.func @transform_5(%arg0: i32, %arg1: i32) -> (i32, i32) {
    %c0_i32 = arith.constant 0 : i32
    %c0_i32_0 = arith.constant 0 : i32
    %c0_i32_1 = arith.constant 0 : i32
    return %c0_i32, %c0_i32_0 : i32, i32
  }
  func.func @transform_6(%arg0: i32, %arg1: i32) -> (i32, i32, i32) {
    %c0_i32 = arith.constant 0 : i32
    %c0_i32_0 = arith.constant 0 : i32
    %c0_i32_1 = arith.constant 0 : i32
    return %arg0, %c0_i32, %c0_i32_0 : i32, i32, i32
  }
}

</mosaic_0001>

<bundles_post_ra>
// kernel: swin_attention_module.2
= control target key start
LH: loop header
LB: loop body
LE: loop exit
PB: predicated region body
PF: predicated region fallthrough
CT: control target
= control target key end

     0   :  { %s1646_s18 = smov 0   ;;  %s1648_s19 = smov 0   ;;  %s1892_s0 = inlined_call_operand.vmem [shape: f32[8,16,32], index: 0, kind: input, shape index: {}]   ;;  %s1893_s1 = inlined_call_operand.vmem [shape: bf16[4,3,32,8], index: 1, kind: input, shape index: {}]   ;;  %s1894_s2 = inlined_call_operand.vmem [shape: f32[4,3,1,8], index: 2, kind: input, shape index: {}]   ;;  %s1895_s3 = inlined_call_operand.vmem [shape: bf16[4,8,32], index: 3, kind: input, shape index: {}]   ;;  %s1896_s4 = inlined_call_operand.vmem [shape: f32[1,32], index: 4, kind: input, shape index: {}]   ;;  %s1897_s5 = inlined_call_operand.vmem [shape: f32[8,16,32], index: 5, kind: output, shape index: {}]  }
   0x1   :  { %s1650_s20 = smov 0   ;;  %s1652_s21 = smov 0  }
   0x2   :  { %s1654_s22 = smov 0  }
   0x3 LB: > { %s24_s23 = sadd.s32 1, %s1604_s20  ;;  %s27_s24 = sadd.s32 1, %s1608_s21  ;;  %s1612_s22 = sphi %s1654_s22, %s15_s22   ;;  %s1608_s21 = sphi %s1652_s21, %s1901_s21   ;;  %s1604_s20 = sphi %s1650_s20, %s1900_s20   ;;  %s1600_s19 = sphi %s1648_s19, %s1899_s19   ;;  %s1596_s18 = sphi %s1646_s18, %s1898_s18  }
   0x4   : > { %p25_p0 = scmp.ge.s32.totalorder %s24_s23, 4  ;;  %p1306_p1 = scmp.ge.s32.totalorder %s1612_s22, 1 }
   0x5   : > { %p229_p2 = scmp.lt.s32.totalorder %s1612_s22, 9 }
   0x6   : > { %s1903_s23 = smov (%p25_p0, %s24_s23), 0  ;;  %s1905_s24 = smov (!%p25_p0, %s27_s24), %s1608_s21 }
   0x7   : > { %p230_p3 = pnand %p1306_p1, %p229_p2  ;;  %p29_p4 = scmp.ge.s32.totalorder %s1905_s24, 2 }
   0x8   : > { %p279_p5 = scmp.lt.s32.totalorder (!%p230_p3), %s1596_s18, 3  ;;  %s1307_s25 = sshll.u32 (!%p230_p3), %s1600_s19, 2  ;;  %vm345_vm0 = vcmask (!%p230_p3), 261120   ;;  %v1614_v18 = vmov (!%p230_p3), 0.0   ;;  %vm1615_vm1 = vmmov (!%p230_p3), 0   ;;  %vm597_vm2 = vcmask (!%p230_p3), 64512  }
   0x9   : > { %s1907_s24 = smov (%p29_p4, %s1905_s24), 0  ;;  %233 = sbr.rel (%p230_p3) target bundleno = 1251 (0x4e3), region = 40 }
   0xa   : > { %p273_p6 = scmp.lt.s32.totalorder (!%p230_p3), %s1307_s25, 7  ;;  %vm786_vm3 = vcmask (!%p230_p3), 130048   ;;  %vm1076_vm4 = vcmask (!%p230_p3), 1043456   ;;  %p1348_p7 = scmp.ne.s32.totalorder (!%p230_p3), %s1596_s18, 0 }
  0x10   : > { %s1680_s26 = scalar_select %p279_p5, %s1596_s18, 3 }
  0x11   : > { %s1909_s25 = smov (!%p273_p6, %s1307_s25), 7 }
  0x12   : > { %s1492_s27 = smul.u32 48, %s1680_s26  ;;  %s1352_s28 = sshll.u32 %s1909_s25, 4 }
  0x13   : > { %s277_s9 = scalar_lea.vmem %s1892_s0, %s1352_s28  ;;  %s1695_s12 = scalar_lea.vmem %s1897_s5, %s1352_s28 }
  0x14   : > { %s1686_s6 = scalar_lea.vmem %s1893_s1, %s1492_s27  ;;  %v1698_v2 = vld [vmem:[%s277_s9 + $0x20] sm:$0xff]  ;;  %v1700_v3 = vld [vmem:[%s277_s9 + $0x28] sm:$0xff]  ;;  %v1702_v4 = vld [vmem:[%s277_s9 + $0x30] sm:$0xff]  ;;  %s1493_s13 = smul.u32 3, %s1680_s26 }
  0x15   : > { %v1536_v0 = vld [vmem:[%s1686_s6] sm:$0xff]   ;;  %v1537_v1 = vld [vmem:[%s1686_s6 + $0x8] sm:$0xff]   ;;  %v310_v5 = vpack.c.bf16 %v1700_v3, %v1698_v2  ;;  %v1706_v6 = vld [vmem:[%s277_s9 + $0x38] sm:$0xff]  ;;  %s1311_s17 = sshll.u32 %s1680_s26, 2 }
  0x16   : > { %1487 = vmatprep.subr.bf16.mxu1 %v1536_v0  ;;  %1393 = vmatprep.subr.bf16.mxu0 %v1536_v0  ;;  %v1538_v7 = vld [vmem:[%s1686_s6 + $0x10] sm:$0xff]   ;;  %v1710_v8 = vld [vmem:[%s277_s9] sm:$0xff]  ;;  %v1712_v9 = vld [vmem:[%s277_s9 + $0x8] sm:$0xff]  ;;  %v311_v10 = vpack.c.bf16 %v1706_v6, %v1702_v4  ;;  %s1748_s16 = scalar_lea.vmem %s1894_s2, %s1493_s13  ;;  %s291_s27 = scalar_lea.vmem %s1895_s3, %s1311_s17 }
  0x17   : > { %1489 = vmatpush3.bf16.msra.mxu1 %v1536_v0  ;;  %1394 = vmatpush3.bf16.msra.mxu0 %v1536_v0  ;;  %v308_v11 = vpack.c.bf16 %v1712_v9, %v1710_v8  ;;  %v1718_v12 = vld [vmem:[%s277_s9 + $0x10] sm:$0xff]  ;;  %v1720_v13 = vld [vmem:[%s277_s9 + $0x18] sm:$0xff]  ;;  %v1540_v16 = vld [vmem:[%s1686_s6 + $0x20] sm:$0xff]  }
  0x18   : > { %1488 = vmatprep.subr.bf16.mxu1 %v1537_v1  ;;  %1395 = vmatprep.subr.bf16.mxu0 %v1537_v1  ;;  %v1539_v14 = vld [vmem:[%s1686_s6 + $0x18] sm:$0xff]   ;;  %v309_v15 = vpack.c.bf16 %v1720_v13, %v1718_v12  ;;  %v1541_v17 = vld [vmem:[%s1686_s6 + $0x28] sm:$0xff]   ;;  %v1315_v19 = vld [vmem:[%s1748_s16] ss:$0 sm:$0xff] }
  0x19   : > { %1401 = vmatprep.mubr.msk.bf16.mxu1 %vm345_vm0, %v310_v5  ;;  %1397 = vmatprep.mubr.msk.bf16.mxu0 %vm345_vm0, %v308_v11  ;;  %v1322_v41 = vld [vmem:[%s1748_s16 + $0x1] ss:$0 sm:$0xff] }
  0x1b   : > { %1490 = vmatpush3.bf16.msra.mxu1 %v1537_v1  ;;  %1396 = vmatpush3.bf16.msra.mxu0 %v1537_v1 }
  0x1c   : > { %1405 = vmatprep.subr.bf16.mxu1 %v1538_v7  ;;  %1417 = vmatprep.subr.bf16.mxu0 %v1540_v16 }
  0x1e   : > { %1402 = vmatmul.mubr.msk.bf16.vlgmr.msra.gmra.mrb[0].mxu1 %vm345_vm0, %v311_v10  ;;  %1398 = vmatmul.mubr.msk.bf16.vlgmr.msra.gmra.mrb[0].mxu0 %vm345_vm0, %v309_v15 }
  0x1f   : > { %1406 = vmatpush3.bf16.msra.mxu1 %v1538_v7  ;;  %1409 = vmatprep.mubr.msk.bf16.mxu1 %vm345_vm0, %v308_v11 }
  0x20   : > { %1407 = vmatprep.subr.bf16.mxu1 %v1539_v14  ;;  %1421 = vmatprep.mubr.msk.bf16.mxu0 %vm345_vm0, %v308_v11 }
  0x21   : > { %1418 = vmatpush3.bf16.msra.mxu0 %v1540_v16 }
  0x22   : > { %1419 = vmatprep.subr.bf16.mxu0 %v1541_v17 }
  0x23   : > { %1408 = vmatpush3.bf16.msra.mxu1 %v1539_v14 }
  0x24   : > { %1429 = vmatprep.subr.bf16.mxu1 %v1614_v18 }
  0x25   : > { %1420 = vmatpush3.bf16.msra.mxu0 %v1541_v17 }
  0x26   : > { %1410 = vmatmul.mubr.msk.bf16.vlgmr.msra.gmra.mrb[4].mxu1 %vm345_vm0, %v309_v15  ;;  %1441 = vmatprep.subr.bf16.mxu0 %v1614_v18 }
  0x27   : > { %1413 = vmatprep.mubr.msk.bf16.mxu1 %vm345_vm0, %v310_v5 }
  0x28   : > { %1422 = vmatmul.mubr.msk.bf16.vlgmr.msra.gmra.mrb[4].mxu0 %vm345_vm0, %v309_v15 }
  0x29   : > { %1425 = vmatprep.mubr.msk.bf16.mxu0 %vm345_vm0, %v310_v5  ;;  %v1329_v5 = vld [vmem:[%s1748_s16 + $0x2] ss:$0 sm:$0xff] }
  0x2e   : > { %1414 = vmatmul.mubr.msk.bf16.gmra.mrb[8].mxu1 %vm345_vm0, %v311_v10 }
  0x2f   : > { %1431 = vmatprep.mubr.msk.bf16.mxu1 %vm1615_vm1, %v1614_v18 }
  0x30   : > { %1426 = vmatmul.mubr.msk.bf16.gmra.mrb[8].mxu0 %vm345_vm0, %v311_v10 }
  0x31   : > { %1443 = vmatprep.mubr.msk.bf16.mxu0 %vm1615_vm1, %v1614_v18 }
  0xf1   : > { %v1403_v20 = vpop.f32.mrb[0].mxu1  ;;  %v1399_v21 = vpop.f32.mrb[0].mxu0 }
  0xf2   : > { %v408_v22 = vpop.f32.mrb[1].mxu1  ;;  %v401_v23 = vadd.f32 %v1399_v21, %v1315_v19  ;;  %v392_v24 = vpop.f32.mrb[1].mxu0  ;;  %v417_v28 = vadd.f32 %v1403_v20, %v1315_v19 }
  0xf3   : > { %v1404_v25 = vpop.f32.mrb[2].mxu1  ;;  %v393_v26 = vadd.f32 %v1315_v19, %v392_v24  ;;  %v1400_v27 = vpop.f32.mrb[2].mxu0  ;;  %v409_v33 = vadd.f32 %v1315_v19, %v408_v22 }
  0xf4   : > { %v420_v29 = vadd.f32 %v1404_v25, %v1315_v19  ;;  %v411_v30 = vpop.f32.mrb[3].mxu1  ;;  %v404_v31 = vadd.f32 %v1400_v27, %v1315_v19  ;;  %v395_v32 = vpop.f32.mrb[3].mxu0 }
  0xf5   : > { %v412_v34 = vadd.f32 %v1315_v19, %v411_v30  ;;  %v396_v35 = vadd.f32 %v1315_v19, %v395_v32 }
  0xf6   : > { %v592_v36 = vpack.c.bf16 %v420_v29, %v417_v28  ;;  %v590_v37 = vpack.c.bf16 %v404_v31, %v401_v23 }
  0xf7   : > { %v591_v38 = vpack.c.bf16 %v412_v34, %v409_v33  ;;  %v589_v39 = vpack.c.bf16 %v396_v35, %v393_v26 }
  0xf9   : > { %v1411_v40 = vpop.f32.mrb[4].mxu1 }
  0xfa   : > { %v475_v42 = vpop.f32.mrb[5].mxu1  ;;  %v484_v44 = vadd.f32 %v1411_v40, %v1322_v41 }
  0xfb   : > { %v1412_v43 = vpop.f32.mrb[6].mxu1  ;;  %v476_v47 = vadd.f32 %v1322_v41, %v475_v42  ;;  %v1423_v1 = vpop.f32.mrb[4].mxu0 }
  0xfc   : > { %v487_v45 = vadd.f32 %v1412_v43, %v1322_v41  ;;  %v478_v46 = vpop.f32.mrb[7].mxu1  ;;  %v558_v7 = vpop.f32.mrb[5].mxu0  ;;  %v567_v10 = vadd.f32 %v1423_v1, %v1329_v5 }
  0xfd   : > { %v479_v48 = vadd.f32 %v1322_v41, %v478_v46  ;;  %v1424_v11 = vpop.f32.mrb[6].mxu0  ;;  %v559_v15 = vadd.f32 %v1329_v5, %v558_v7 }
  0xfe   : > { %v594_v49 = vpack.c.bf16 %v487_v45, %v484_v44  ;;  %v561_v14 = vpop.f32.mrb[7].mxu0  ;;  %v570_v16 = vadd.f32 %v1424_v11, %v1329_v5 }
  0xff   : > { %v593_v50 = vpack.c.bf16 %v479_v48, %v476_v47  ;;  %v562_v17 = vadd.f32 %v1329_v5, %v561_v14 }
 0x100   : > { %v649_v62 = vsel %vm597_vm2, %v594_v49, 0  ;;  %v880_v19 = vpack.c.bf16 %v570_v16, %v567_v10 }
 0x101   : > { %v1415_v51 = vpop.f32.mrb[8].mxu1  ;;  %v602_v52 = vsel %vm597_vm2, %v593_v50, 0  ;;  %v879_v20 = vpack.c.bf16 %v562_v17, %v559_v15 }
 0x102   : > { %v500_v53 = vadd.f32 %v1415_v51, %v1322_v41  ;;  %v491_v54 = vpop.f32.mrb[9].mxu1  ;;  %1430 = vmatpush3.bf16.xpose.msra.mxu1 %v602_v52 }
 0x103   : > { %v492_v55 = vadd.f32 %v1322_v41, %v491_v54  ;;  %v1416_v56 = vpop.f32.mrb[10].mxu1  ;;  %1435 = vmatprep.subr.bf16.mxu1 %v1614_v18  ;;  %v1427_v21 = vpop.f32.mrb[8].mxu0 }
 0x104   : > { %v503_v57 = vadd.f32 %v1416_v56, %v1322_v41  ;;  %v494_v58 = vpop.f32.mrb[11].mxu1  ;;  %v1773_v22 = vadd.f32 %v1427_v21, %v1329_v5  ;;  %v574_v23 = vpop.f32.mrb[9].mxu0 }
 0x105   : > { %v495_v59 = vadd.f32 %v1322_v41, %v494_v58  ;;  %v1775_v24 = vadd.f32 %v1329_v5, %v574_v23  ;;  %v1428_v25 = vpop.f32.mrb[10].mxu0 }
 0x106   : > { %v596_v60 = vpack.c.bf16 %v503_v57, %v500_v53  ;;  %v1779_v26 = vadd.f32 %v1428_v25, %v1329_v5  ;;  %v577_v27 = vpop.f32.mrb[11].mxu0 }
 0x107   : > { %v595_v61 = vpack.c.bf16 %v495_v59, %v492_v55  ;;  %v1783_v29 = vadd.f32 %v1329_v5, %v577_v27 }
 0x108   : > { %v743_v0 = vsel %vm597_vm2, %v596_v60, 0  ;;  %v882_v28 = vpack.c.bf16 %v1779_v26, %v1773_v22 }
 0x109   : > { %1432 = vmatmul.mubr.msk.bf16.vlgmr.msra.gmra.mrb[12].mxu1 %vm597_vm2, %v589_v39  ;;  %v696_v63 = vsel %vm597_vm2, %v595_v61, 0  ;;  %v881_v30 = vpack.c.bf16 %v1783_v29, %v1775_v24 }
 0x10a   : > { %1436 = vmatpush3.bf16.xpose.msra.mxu1 %v649_v62  ;;  %1442 = vmatpush3.bf16.xpose.msra.mxu0 %v696_v63 }
 0x10b   : > { %1437 = vmatprep.mubr.msk.bf16.mxu1 %vm1615_vm1, %v1614_v18  ;;  %1447 = vmatprep.subr.bf16.mxu1 %v1614_v18 }
 0x10c   : > { %1453 = vmatprep.subr.bf16.mxu0 %v1614_v18 }
 0x111   : > { %1438 = vmatmul.mubr.msk.bf16.vlgmr.msra.gmra.mrb[16].mxu1 %vm597_vm2, %v590_v37  ;;  %1444 = vmatmul.mubr.msk.bf16.vlgmr.msra.gmra.mrb[12].mxu0 %vm597_vm2, %v591_v38 }
 0x112   : > { %1448 = vmatpush3.bf16.xpose.msra.mxu1 %v743_v0  ;;  %1449 = vmatprep.mubr.msk.bf16.mxu1 %vm1615_vm1, %v1614_v18 }
 0x113   : > { %1459 = vmatprep.subr.bf16.mxu1 %v1614_v18  ;;  %1455 = vmatprep.mubr.msk.bf16.mxu0 %vm1615_vm1, %v1614_v18 }
 0x114   : > { %1454 = vmatpush3.bf16.msra.mxu0 %v879_v20 }
 0x115   : > { %1465 = vmatprep.subr.bf16.mxu0 %v1614_v18 }
 0x119   : > { %1450 = vmatmul.mubr.msk.bf16.vlgmr.msra.gmra.mrb[20].mxu1 %vm597_vm2, %v592_v36 }
 0x11a   : > { %1461 = vmatprep.mubr.msk.bf16.mxu1 %vm1615_vm1, %v1614_v18  ;;  %1460 = vmatpush3.bf16.msra.mxu1 %v880_v19 }
 0x11b   : > { %1471 = vmatprep.subr.bf16.mxu1 %v1614_v18 }
 0x1dc   : > { %v638_v31 = vpop.f32.mrb[12].mxu1 }
 0x1dd   : > { %v787_v32 = vsel %vm786_vm3, %v638_v31, -inf  ;;  %v1433_v33 = vpop.f32.mrb[13].mxu1 }
 0x1de   : > { %788 = vmax.xlane.f32.xlu0 %v787_v32  ;;  %v641_v34 = vpop.f32.mrb[14].mxu1 }
 0x1df   : > { %v1434_v35 = vpop.f32.mrb[15].mxu1  ;;  %v790_v36 = vsel %vm786_vm3, %v641_v34, -inf }
 0x1e2   : > { %791 = vmax.xlane.f32.xlu0 %v790_v36 }
 0x1e4   : > { %v685_v37 = vpop.f32.mrb[16].mxu1  ;;  %v732_v38 = vpop.f32.mrb[12].mxu0 }
 0x1e5   : > { %v1439_v39 = vpop.f32.mrb[17].mxu1  ;;  %v1445_v40 = vpop.f32.mrb[13].mxu0  ;;  %v799_v41 = vsel %vm786_vm3, %v732_v38, -inf  ;;  %v793_v42 = vsel %vm786_vm3, %v685_v37, -inf }
 0x1e6   : > { %v735_v43 = vpop.f32.mrb[14].mxu0  ;;  %800 = vmax.xlane.f32.xlu0 %v799_v41  ;;  %794 = vmax.xlane.f32.xlu1 %v793_v42  ;;  %v688_v44 = vpop.f32.mrb[18].mxu1 }
 0x1e7   : > { %v1440_v45 = vpop.f32.mrb[19].mxu1  ;;  %v1446_v46 = vpop.f32.mrb[15].mxu0  ;;  %v796_v47 = vsel %vm786_vm3, %v688_v44, -inf  ;;  %v802_v50 = vsel %vm786_vm3, %v735_v43, -inf }
 0x1ea   : > { %797 = vmax.xlane.f32.xlu1 %v796_v47 }
 0x1ec   : > { %v779_v48 = vpop.f32.mrb[20].mxu1 }
 0x1ed   : > { %v1451_v49 = vpop.f32.mrb[21].mxu1  ;;  %v805_v51 = vsel %vm786_vm3, %v779_v48, -inf }
 0x1ee   : > { %803 = vmax.xlane.f32.xlu1 %v802_v50  ;;  %806 = vmax.xlane.f32.xlu0 %v805_v51  ;;  %v782_v52 = vpop.f32.mrb[22].mxu1 }
 0x1ef   : > { %v1452_v53 = vpop.f32.mrb[23].mxu1  ;;  %v808_v54 = vsel %vm786_vm3, %v782_v52, -inf }
 0x1f2   : > { %809 = vmax.xlane.f32.xlu1 %v808_v54 }
 0x26b   : > { %v789_v55 = vpop.xlane.xlu0 %788 }
 0x26c   : > { %v811_v56 = vsub.f32 %v638_v31, %v789_v55 }
 0x26e   : > { %v819_v57 = vmul.f32 1.442695, %v811_v56 }
 0x26f   : > { %v792_v58 = vpop.xlane.xlu0 %791 }
 0x270   : > { %1542 = vpow2.f32 %v819_v57  ;;  %v812_v59 = vsub.f32 %v641_v34, %v792_v58 }
 0x272   : > { %v821_v60 = vmul.f32 1.442695, %v812_v59 }
 0x273   : > { %v801_v61 = vpop.xlane.xlu0 %800  ;;  %v795_v62 = vpop.xlane.xlu1 %794 }
 0x274   : > { %1544 = vpow2.f32 %v821_v60  ;;  %v815_v63 = vsub.f32 %v732_v38, %v801_v61  ;;  %v813_v0 = vsub.f32 %v685_v37, %v795_v62 }
 0x276   : > { %v823_v1 = vmul.f32 1.442695, %v813_v0  ;;  %v827_v5 = vmul.f32 1.442695, %v815_v63 }
 0x277   : > { %v798_v7 = vpop.xlane.xlu1 %797 }
 0x278   : > { %v814_v10 = vsub.f32 %v688_v44, %v798_v7  ;;  %1546 = vpow2.f32 %v823_v1 }
 0x279   : > { %1548 = vpow2.f32 %v827_v5 }
 0x27a   : > { %v1543_v11 = vpop.eup %1542  ;;  %v825_v14 = vmul.f32 1.442695, %v814_v10 }
 0x27b   : > { %v804_v15 = vpop.xlane.xlu1 %803  ;;  %v807_v16 = vpop.xlane.xlu0 %806  ;;  %v835_v17 = vsel %vm786_vm3, %v1543_v11, 0.0 }
 0x27c   : > { %1550 = vpow2.f32 %v825_v14  ;;  %v816_v19 = vsub.f32 %v735_v43, %v804_v15  ;;  %v817_v20 = vsub.f32 %v779_v48, %v807_v16  ;;  %836 = vadd.xlane.f32.xlu0 %v835_v17  ;;  %v1063_v15 = vld [vmem:[%s291_s27] sm:$0xf] }
 0x27d   : > { %v1078_v22 = vsel %vm1076_vm4, %v1063_v15, 0 }
 0x27e   : > { %v1545_v21 = vpop.eup %1544  ;;  %v829_v23 = vmul.f32 1.442695, %v816_v19  ;;  %v831_v25 = vmul.f32 1.442695, %v817_v20 }
 0x27f   : > { %v810_v27 = vpop.xlane.xlu1 %809  ;;  %v838_v31 = vsel %vm786_vm3, %v1545_v21, 0.0 }
 0x280   : > { %1552 = vpow2.f32 %v829_v23  ;;  %v818_v32 = vsub.f32 %v782_v52, %v810_v27  ;;  %839 = vadd.xlane.f32.xlu1 %v838_v31 }
 0x281   : > { %1554 = vpow2.f32 %v831_v25 }
 0x282   : > { %v833_v33 = vmul.f32 1.442695, %v818_v32  ;;  %v1547_v34 = vpop.eup %1546 }
 0x283   : > { %v841_v35 = vsel %vm786_vm3, %v1547_v34, 0.0  ;;  %v1549_v36 = vpop.eup %1548 }
 0x284   : > { %1556 = vpow2.f32 %v833_v33  ;;  %842 = vadd.xlane.f32.xlu0 %v841_v35  ;;  %v847_v39 = vsel %vm786_vm3, %v1549_v36, 0.0 }
 0x286   : > { %v1551_v37 = vpop.eup %1550 }
 0x287   : > { %v844_v38 = vsel %vm786_vm3, %v1551_v37, 0.0 }
 0x288   : > { %845 = vadd.xlane.f32.xlu1 %v844_v38  ;;  %848 = vadd.xlane.f32.xlu0 %v847_v39 }
 0x28a   : > { %v1553_v40 = vpop.eup %1552 }
 0x28b   : > { %v1555_v41 = vpop.eup %1554  ;;  %v850_v42 = vsel %vm786_vm3, %v1553_v40, 0.0 }
 0x28c   : > { %v853_v43 = vsel %vm786_vm3, %v1555_v41, 0.0  ;;  %851 = vadd.xlane.f32.xlu1 %v850_v42 }
 0x28d   : > { %854 = vadd.xlane.f32.xlu0 %v853_v43 }
 0x28e   : > { %v1557_v44 = vpop.eup %1556 }
 0x28f   : > { %v856_v45 = vsel %vm786_vm3, %v1557_v44, 0.0 }
 0x290   : > { %857 = vadd.xlane.f32.xlu1 %v856_v45 }
 0x309   : > { %v837_v46 = vpop.xlane.xlu0 %836 }
 0x30a   : > { %1558 = vrcp.f32 %v837_v46 }
 0x30d   : > { %v840_v47 = vpop.xlane.xlu1 %839 }
 0x30e   : > { %1560 = vrcp.f32 %v840_v47 }
 0x311   : > { %v843_v48 = vpop.xlane.xlu0 %842 }
 0x312   : > { %1562 = vrcp.f32 %v843_v48  ;;  %v1349_v48 = vld [vmem:[%s1896_s4] ss:$0 sm:$0xff] (!%p1348_p7) }
 0x314   : > { %v1559_v50 = vpop.eup %1558 }
 0x315   : > { %v846_v49 = vpop.xlane.xlu1 %845  ;;  %v849_v51 = vpop.xlane.xlu0 %848  ;;  %v867_v53 = vmul.f32 %v1559_v50, %v1543_v11  ;;  %v1157_v50 = vadd.f32 (!%p1348_p7), %v1349_v48, %v1712_v9 }
 0x316   : > { %1564 = vrcp.f32 %v846_v49  ;;  %v1156_v49 = vadd.f32 (!%p1348_p7), %v1349_v48, %v1710_v8 }
 0x317   : > { %1566 = vrcp.f32 %v849_v51  ;;  %v1158_v51 = vadd.f32 (!%p1348_p7), %v1349_v48, %v1718_v12  ;;  %1165 = vst.msk [vmem:[%s1695_s12 + $0x8] sm:$0xff] (!%p1348_p7), %vm345_vm0, %v1157_v50 }
 0x318   : > { %v1561_v52 = vpop.eup %1560  ;;  %1164 = vst.msk [vmem:[%s1695_s12] sm:$0xff] (!%p1348_p7), %vm345_vm0, %v1156_v49 }
 0x319   : > { %v868_v54 = vmul.f32 %v1561_v52, %v1545_v21  ;;  %v852_v55 = vpop.xlane.xlu1 %851  ;;  %v1159_v52 = vadd.f32 (!%p1348_p7), %v1349_v48, %v1720_v13  ;;  %1166 = vst.msk [vmem:[%s1695_s12 + $0x10] sm:$0xff] (!%p1348_p7), %vm345_vm0, %v1158_v51 }
 0x31a   : > { %v855_v56 = vpop.xlane.xlu0 %854  ;;  %1568 = vrcp.f32 %v852_v55  ;;  %v1162_v55 = vadd.f32 (!%p1348_p7), %v1349_v48, %v1702_v4 }
 0x31b   : > { %v875_v57 = vpack.c.bf16 %v868_v54, %v867_v53  ;;  %1570 = vrcp.f32 %v855_v56  ;;  %v1160_v53 = vadd.f32 (!%p1348_p7), %v1349_v48, %v1698_v2  ;;  %v1161_v54 = vadd.f32 (!%p1348_p7), %v1349_v48, %v1700_v3  ;;  %1167 = vst.msk [vmem:[%s1695_s12 + $0x18] sm:$0xff] (!%p1348_p7), %vm345_vm0, %v1159_v52 }
 0x31c   : > { %v1563_v59 = vpop.eup %1562  ;;  %v1163_v56 = vadd.f32 (!%p1348_p7), %v1349_v48, %v1706_v6  ;;  %1170 = vst.msk [vmem:[%s1695_s12 + $0x30] sm:$0xff] (!%p1348_p7), %vm345_vm0, %v1162_v55 }
 0x31d   : > { %1456 = vmatmul.mubr.msk.bf16.vlgmr.msra.gmra.mrb[16].mxu0 %vm786_vm3, %v875_v57  ;;  %v858_v58 = vpop.xlane.xlu1 %857  ;;  %v869_v61 = vmul.f32 %v1563_v59, %v1547_v34  ;;  %1168 = vst.msk [vmem:[%s1695_s12 + $0x20] sm:$0xff] (!%p1348_p7), %vm345_vm0, %v1160_v53  ;;  %1169 = vst.msk [vmem:[%s1695_s12 + $0x28] sm:$0xff] (!%p1348_p7), %vm345_vm0, %v1161_v54 }
 0x31e   : > { %1466 = vmatpush3.bf16.msra.mxu0 %v881_v30  ;;  %1572 = vrcp.f32 %v858_v58  ;;  %1467 = vmatprep.mubr.msk.bf16.mxu0 %vm1615_vm1, %v1614_v18  ;;  %1171 = vst.msk [vmem:[%s1695_s12 + $0x38] sm:$0xff] (!%p1348_p7), %vm345_vm0, %v1163_v56 }
 0x31f   : > { %1491 = vmatprep.subr.msk.bf16.mxu0 %vm1076_vm4, %v1063_v15 }
 0x320   : > { %v1565_v60 = vpop.eup %1564 }
 0x321   : > { %v870_v62 = vmul.f32 %v1565_v60, %v1551_v37  ;;  %v1567_v63 = vpop.eup %1566 }
 0x322   : > { %v871_v5 = vmul.f32 %v1567_v63, %v1549_v36 }
 0x323   : > { %v876_v0 = vpack.c.bf16 %v870_v62, %v869_v61 }
 0x324   : > { %v1569_v1 = vpop.eup %1568 }
 0x325   : > { %v872_v7 = vmul.f32 %v1569_v1, %v1553_v40  ;;  %1462 = vmatmul.mubr.msk.bf16.vlgmr.msra.gmra.mrb[24].mxu1 %vm786_vm3, %v876_v0  ;;  %v1571_v10 = vpop.eup %1570 }
 0x326   : > { %1472 = vmatpush3.bf16.msra.mxu1 %v882_v28  ;;  %1473 = vmatprep.mubr.msk.bf16.mxu1 %vm1615_vm1, %v1614_v18  ;;  %v873_v30 = vmul.f32 %v1571_v10, %v1555_v41 }
 0x327   : > { %v877_v24 = vpack.c.bf16 %v872_v7, %v871_v5 }
 0x328   : > { %v1573_v29 = vpop.eup %1572 }
 0x329   : > { %v874_v11 = vmul.f32 %v1573_v29, %v1557_v44  ;;  %1468 = vmatmul.mubr.msk.bf16.vlgmr.msra.gmra.mrb[20].mxu0 %vm786_vm3, %v877_v24 }
 0x32a   : > { %1478 = vmatpush3.bf16.msra.mxu0 %v1078_v22 }
 0x32b   : > { %v878_v14 = vpack.c.bf16 %v874_v11, %v873_v30 }
 0x32d   : > { %1474 = vmatmul.mubr.msk.bf16.vlgmr.msra.gmra.mrb[28].mxu1 %vm786_vm3, %v878_v14 }
 0x3f0   : > { %v920_v18 = vpop.f32.mrb[16].mxu0 }
 0x3f1   : > { %v1457_v26 = vpop.f32.mrb[17].mxu0 }
 0x3f2   : > { %v923_v28 = vpop.f32.mrb[18].mxu0 }
 0x3f3   : > { %v1059_v16 = vpack.c.bf16 %v923_v28, %v920_v18  ;;  %v1458_v17 = vpop.f32.mrb[19].mxu0 }
 0x3f5   : > { %1479 = vmatprep.mubr.msk.bf16.mxu0 %vm597_vm2, %v1059_v16 }
 0x3f8   : > { %v964_v19 = vpop.f32.mrb[24].mxu1 }
 0x3f9   : > { %v1463_v20 = vpop.f32.mrb[25].mxu1 }
 0x3fa   : > { %v967_v21 = vpop.f32.mrb[26].mxu1 }
 0x3fb   : > { %v1060_v23 = vpack.c.bf16 %v967_v21, %v964_v19  ;;  %v1464_v25 = vpop.f32.mrb[27].mxu1 }
 0x3fc   : > { %v1008_v27 = vpop.f32.mrb[20].mxu0 }
 0x3fd   : > { %v1469_v31 = vpop.f32.mrb[21].mxu0  ;;  %1480 = vmatmul.mubr.msk.bf16.vlgmr.msra.gmra.mrb[24].mxu0 %vm597_vm2, %v1060_v23 }
 0x3fe   : > { %v1011_v32 = vpop.f32.mrb[22].mxu0 }
 0x3ff   : > { %v1061_v33 = vpack.c.bf16 %v1011_v32, %v1008_v27  ;;  %v1470_v34 = vpop.f32.mrb[23].mxu0 }
 0x400   : > { %v1052_v35 = vpop.f32.mrb[28].mxu1 }
 0x401   : > { %v1475_v36 = vpop.f32.mrb[29].mxu1  ;;  %1483 = vmatprep.mubr.msk.bf16.mxu0 %vm597_vm2, %v1061_v33 }
 0x402   : > { %v1055_v37 = vpop.f32.mrb[30].mxu1 }
 0x403   : > { %v1062_v38 = vpack.c.bf16 %v1055_v37, %v1052_v35  ;;  %v1476_v39 = vpop.f32.mrb[31].mxu1 }
 0x405   : > { %1484 = vmatmul.mubr.msk.bf16.gmra.mrb[28].mxu0 %vm597_vm2, %v1062_v38 }
 0x4d0   : > { %v1481_v40 = vpop.f32.mrb[24].mxu0 }
 0x4d1   : > { %v1114_v41 = vpop.f32.mrb[25].mxu0 }
 0x4d2   : > { %v1482_v42 = vpop.f32.mrb[26].mxu0 }
 0x4d3   : > { %v1117_v43 = vpop.f32.mrb[27].mxu0 }
 0x4d5   : > { %1148 = sbr.rel (%p1348_p7) target bundleno = 1244 (0x4dc), region = 44 }
 0x4d8   : > { %v1485_v44 = vpop.f32.mrb[28].mxu0 }
 0x4d9   : > { %v1130_v45 = vpop.f32.mrb[29].mxu0 }
 0x4da   : > { %v1486_v46 = vpop.f32.mrb[30].mxu0 }
 0x4db   : > { %v1133_v47 = vpop.f32.mrb[31].mxu0 }
 0x4dc PF: > { %v1172_v2 = vld [vmem:[%s1695_s12] sm:$0xff]  ;;  %v1174_v3 = vld [vmem:[%s1695_s12 + $0x10] sm:$0xff]  ;;  %v1173_v12 = vld [vmem:[%s1695_s12 + $0x8] sm:$0xff] }
 0x4dd   : > { %v1176_v4 = vld [vmem:[%s1695_s12 + $0x20] sm:$0xff]  ;;  %v1178_v6 = vld [vmem:[%s1695_s12 + $0x30] sm:$0xff]  ;;  %v1180_v8 = vadd.f32 %v1172_v2, %v1114_v41  ;;  %v1182_v9 = vadd.f32 %v1481_v40, %v1174_v3  ;;  %v1175_v13 = vld [vmem:[%s1695_s12 + $0x18] sm:$0xff]  ;;  %v1181_v60 = vadd.f32 %v1173_v12, %v1117_v43 }
 0x4de   : > { %v1184_v57 = vadd.f32 %v1176_v4, %v1130_v45  ;;  %v1177_v58 = vld [vmem:[%s1695_s12 + $0x28] sm:$0xff]  ;;  %v1179_v59 = vld [vmem:[%s1695_s12 + $0x38] sm:$0xff]  ;;  %v1183_v61 = vadd.f32 %v1482_v42, %v1175_v13  ;;  %v1186_v62 = vadd.f32 %v1485_v44, %v1178_v6 }
 0x4df   : > { %1188 = vst.msk [vmem:[%s1695_s12] sm:$0xff] %vm345_vm0, %v1180_v8  ;;  %v1185_v63 = vadd.f32 %v1177_v58, %v1133_v47  ;;  %v1187_v0 = vadd.f32 %v1486_v46, %v1179_v59  ;;  %1190 = vst.msk [vmem:[%s1695_s12 + $0x10] sm:$0xff] %vm345_vm0, %v1182_v9 }
 0x4e0   : > { %1189 = vst.msk [vmem:[%s1695_s12 + $0x8] sm:$0xff] %vm345_vm0, %v1181_v60  ;;  %1191 = vst.msk [vmem:[%s1695_s12 + $0x18] sm:$0xff] %vm345_vm0, %v1183_v61 }
 0x4e1   : > { %1192 = vst.msk [vmem:[%s1695_s12 + $0x20] sm:$0xff] %vm345_vm0, %v1184_v57  ;;  %1193 = vst.msk [vmem:[%s1695_s12 + $0x28] sm:$0xff] %vm345_vm0, %v1185_v63 }
 0x4e2   : > { %1194 = vst.msk [vmem:[%s1695_s12 + $0x30] sm:$0xff] %vm345_vm0, %v1186_v62  ;;  %1195 = vst.msk [vmem:[%s1695_s12 + $0x38] sm:$0xff] %vm345_vm0, %v1187_v0 }
 0x4e3 PF: > { %s15_s22 = sadd.s32 1, %s1612_s22   ;;  %s1898_s18 = smov %s1604_s20 }
 0x4e4   : > { %p12_p8 = scmp.ge.s32.totalorder %s15_s22, 10   ;;  %s1899_s19 = smov %s1608_s21 }
 0x4e5   : > { %s1900_s20 = smov %s1903_s23  ;;  %s1901_s21 = smov %s1907_s24 }
 0x4e6   :  { %14 = sbr.rel (!%p12_p8) target bundleno = 3 (0x3), region = 83 }

// kernel: swin_attention_module.3
= control target key start
LH: loop header
LB: loop body
LE: loop exit
PB: predicated region body
PF: predicated region fallthrough
CT: control target
= control target key end

     0   :  { %s1678_s21 = smov 0   ;;  %s1680_s22 = smov 0   ;;  %s1916_s0 = inlined_call_operand.vmem [shape: f32[8,16,32], index: 0, kind: input, shape index: {}]   ;;  %s1917_s1 = inlined_call_operand.vmem [shape: f32[4,16,16], index: 1, kind: input, shape index: {}]   ;;  %s1918_s2 = inlined_call_operand.vmem [shape: bf16[4,3,32,8], index: 2, kind: input, shape index: {}]   ;;  %s1919_s3 = inlined_call_operand.vmem [shape: f32[4,3,1,8], index: 3, kind: input, shape index: {}]   ;;  %s1920_s4 = inlined_call_operand.vmem [shape: bf16[4,8,32], index: 4, kind: input, shape index: {}]   ;;  %s1921_s5 = inlined_call_operand.vmem [shape: f32[1,32], index: 5, kind: input, shape index: {}]   ;;  %s1922_s6 = inlined_call_operand.vmem [shape: f32[8,16,32], index: 6, kind: output, shape index: {}]  }
   0x1   :  { %s1682_s23 = smov 0   ;;  %s1684_s24 = smov 0  }
   0x2   :  { %s1686_s25 = smov 0  }
   0x3 LB: > { %s25_s26 = sadd.s32 1, %s1631_s23  ;;  %s28_s27 = sadd.s32 1, %s1635_s24  ;;  %s1639_s25 = sphi %s1686_s25, %s16_s25   ;;  %s1635_s24 = sphi %s1684_s24, %s1926_s24   ;;  %s1631_s23 = sphi %s1682_s23, %s1925_s23   ;;  %s1627_s22 = sphi %s1680_s22, %s1924_s22   ;;  %s1623_s21 = sphi %s1678_s21, %s1923_s21  }
   0x4   : > { %p26_p0 = scmp.ge.s32.totalorder %s25_s26, 4  ;;  %p1333_p1 = scmp.ge.s32.totalorder %s1639_s25, 1 }
   0x5   : > { %p254_p2 = scmp.lt.s32.totalorder %s1639_s25, 9 }
   0x6   : > { %s1928_s26 = smov (%p26_p0, %s25_s26), 0  ;;  %s1930_s27 = smov (!%p26_p0, %s28_s27), %s1635_s24 }
   0x7   : > { %p255_p3 = pnand %p1333_p1, %p254_p2  ;;  %p30_p4 = scmp.ge.s32.totalorder %s1930_s27, 2 }
   0x8   : > { %p306_p5 = scmp.lt.s32.totalorder (!%p255_p3), %s1623_s21, 3  ;;  %s1334_s28 = sshll.u32 (!%p255_p3), %s1627_s22, 2  ;;  %vm372_vm0 = vcmask (!%p255_p3), 261120   ;;  %v1641_v18 = vmov (!%p255_p3), 0.0   ;;  %vm1642_vm1 = vmmov (!%p255_p3), 0   ;;  %vm632_vm2 = vcmask (!%p255_p3), 64512  }
   0x9   : > { %s1932_s27 = smov (%p30_p4, %s1930_s27), 0  ;;  %258 = sbr.rel (%p255_p3) target bundleno = 1253 (0x4e5), region = 44 }
   0xa   : > { %p300_p6 = scmp.lt.s32.totalorder (!%p255_p3), %s1334_s28, 7  ;;  %vm821_vm3 = vcmask (!%p255_p3), 130048   ;;  %vm1111_vm4 = vcmask (!%p255_p3), 1043456   ;;  %p1375_p7 = scmp.ne.s32.totalorder (!%p255_p3), %s1623_s21, 0 }
  0x10   : > { %s1712_s29 = scalar_select %p306_p5, %s1623_s21, 3 }
  0x11   : > { %s1934_s28 = smov (!%p300_p6, %s1334_s28), 7 }
  0x12   : > { %s1519_s30 = smul.u32 48, %s1712_s29  ;;  %s1379_s7 = sshll.u32 %s1934_s28, 4 }
  0x13   : > { %s304_s13 = scalar_lea.vmem %s1916_s0, %s1379_s7  ;;  %s1727_s16 = scalar_lea.vmem %s1922_s6, %s1379_s7 }
  0x14   : > { %s1718_s10 = scalar_lea.vmem %s1918_s2, %s1519_s30  ;;  %v331_v2 = vld [vmem:[%s304_s13 + $0x20] sm:$0xff]  ;;  %v332_v3 = vld [vmem:[%s304_s13 + $0x28] sm:$0xff]  ;;  %v333_v4 = vld [vmem:[%s304_s13 + $0x30] sm:$0xff]  ;;  %s1520_s17 = smul.u32 3, %s1712_s29 }
  0x15   : > { %v1563_v0 = vld [vmem:[%s1718_s10] sm:$0xff]   ;;  %v1564_v1 = vld [vmem:[%s1718_s10 + $0x8] sm:$0xff]   ;;  %v337_v5 = vpack.c.bf16 %v332_v3, %v331_v2  ;;  %v334_v6 = vld [vmem:[%s304_s13 + $0x38] sm:$0xff]  ;;  %s1338_s22 = sshll.u32 %s1712_s29, 2 }
  0x16   : > { %1514 = vmatprep.subr.bf16.mxu1 %v1563_v0  ;;  %1420 = vmatprep.subr.bf16.mxu0 %v1563_v0  ;;  %v1565_v7 = vld [vmem:[%s1718_s10 + $0x10] sm:$0xff]   ;;  %v327_v8 = vld [vmem:[%s304_s13] sm:$0xff]  ;;  %v328_v9 = vld [vmem:[%s304_s13 + $0x8] sm:$0xff]  ;;  %v338_v10 = vpack.c.bf16 %v334_v6, %v333_v4  ;;  %s1756_s20 = scalar_lea.vmem %s1919_s3, %s1520_s17  ;;  %s318_s7 = scalar_lea.vmem %s1920_s4, %s1338_s22 }
  0x17   : > { %1516 = vmatpush3.bf16.msra.mxu1 %v1563_v0  ;;  %1421 = vmatpush3.bf16.msra.mxu0 %v1563_v0  ;;  %v335_v11 = vpack.c.bf16 %v328_v9, %v327_v8  ;;  %v329_v12 = vld [vmem:[%s304_s13 + $0x10] sm:$0xff]  ;;  %v330_v13 = vld [vmem:[%s304_s13 + $0x18] sm:$0xff]  ;;  %v1567_v16 = vld [vmem:[%s1718_s10 + $0x20] sm:$0xff]  }
  0x18   : > { %1515 = vmatprep.subr.bf16.mxu1 %v1564_v1  ;;  %1422 = vmatprep.subr.bf16.mxu0 %v1564_v1  ;;  %v1566_v14 = vld [vmem:[%s1718_s10 + $0x18] sm:$0xff]   ;;  %v336_v15 = vpack.c.bf16 %v330_v13, %v329_v12  ;;  %v1568_v17 = vld [vmem:[%s1718_s10 + $0x28] sm:$0xff]   ;;  %v1342_v19 = vld [vmem:[%s1756_s20] ss:$0 sm:$0xff] }
  0x19   : > { %1428 = vmatprep.mubr.msk.bf16.mxu1 %vm372_vm0, %v337_v5  ;;  %1424 = vmatprep.mubr.msk.bf16.mxu0 %vm372_vm0, %v335_v11  ;;  %v1349_v41 = vld [vmem:[%s1756_s20 + $0x1] ss:$0 sm:$0xff]  ;;  %v1356_v2 = vld [vmem:[%s1756_s20 + $0x2] ss:$0 sm:$0xff] }
  0x1b   : > { %1517 = vmatpush3.bf16.msra.mxu1 %v1564_v1  ;;  %1423 = vmatpush3.bf16.msra.mxu0 %v1564_v1 }
  0x1c   : > { %1432 = vmatprep.subr.bf16.mxu1 %v1565_v7  ;;  %1444 = vmatprep.subr.bf16.mxu0 %v1567_v16 }
  0x1e   : > { %1429 = vmatmul.mubr.msk.bf16.vlgmr.msra.gmra.mrb[0].mxu1 %vm372_vm0, %v338_v10  ;;  %1425 = vmatmul.mubr.msk.bf16.vlgmr.msra.gmra.mrb[0].mxu0 %vm372_vm0, %v336_v15 }
  0x1f   : > { %1433 = vmatpush3.bf16.msra.mxu1 %v1565_v7  ;;  %1436 = vmatprep.mubr.msk.bf16.mxu1 %vm372_vm0, %v335_v11 }
  0x20   : > { %1434 = vmatprep.subr.bf16.mxu1 %v1566_v14  ;;  %1448 = vmatprep.mubr.msk.bf16.mxu0 %vm372_vm0, %v335_v11 }
  0x21   : > { %1445 = vmatpush3.bf16.msra.mxu0 %v1567_v16 }
  0x22   : > { %1446 = vmatprep.subr.bf16.mxu0 %v1568_v17 }
  0x23   : > { %1435 = vmatpush3.bf16.msra.mxu1 %v1566_v14 }
  0x24   : > { %1456 = vmatprep.subr.bf16.mxu1 %v1641_v18 }
  0x25   : > { %1447 = vmatpush3.bf16.msra.mxu0 %v1568_v17 }
  0x26   : > { %1437 = vmatmul.mubr.msk.bf16.vlgmr.msra.gmra.mrb[4].mxu1 %vm372_vm0, %v336_v15  ;;  %1468 = vmatprep.subr.bf16.mxu0 %v1641_v18 }
  0x27   : > { %1440 = vmatprep.mubr.msk.bf16.mxu1 %vm372_vm0, %v337_v5 }
  0x28   : > { %1449 = vmatmul.mubr.msk.bf16.vlgmr.msra.gmra.mrb[4].mxu0 %vm372_vm0, %v336_v15 }
  0x29   : > { %1452 = vmatprep.mubr.msk.bf16.mxu0 %vm372_vm0, %v337_v5 }
  0x2e   : > { %1441 = vmatmul.mubr.msk.bf16.gmra.mrb[8].mxu1 %vm372_vm0, %v338_v10 }
  0x2f   : > { %1458 = vmatprep.mubr.msk.bf16.mxu1 %vm1642_vm1, %v1641_v18 }
  0x30   : > { %1453 = vmatmul.mubr.msk.bf16.gmra.mrb[8].mxu0 %vm372_vm0, %v338_v10 }
  0x31   : > { %1470 = vmatprep.mubr.msk.bf16.mxu0 %vm1642_vm1, %v1641_v18 }
  0xf1   : > { %v1430_v20 = vpop.f32.mrb[0].mxu1  ;;  %v1426_v21 = vpop.f32.mrb[0].mxu0 }
  0xf2   : > { %v435_v22 = vpop.f32.mrb[1].mxu1  ;;  %v428_v23 = vadd.f32 %v1426_v21, %v1342_v19  ;;  %v419_v24 = vpop.f32.mrb[1].mxu0  ;;  %v444_v28 = vadd.f32 %v1430_v20, %v1342_v19 }
  0xf3   : > { %v1431_v25 = vpop.f32.mrb[2].mxu1  ;;  %v420_v26 = vadd.f32 %v1342_v19, %v419_v24  ;;  %v1427_v27 = vpop.f32.mrb[2].mxu0  ;;  %v436_v33 = vadd.f32 %v1342_v19, %v435_v22 }
  0xf4   : > { %v447_v29 = vadd.f32 %v1431_v25, %v1342_v19  ;;  %v438_v30 = vpop.f32.mrb[3].mxu1  ;;  %v431_v31 = vadd.f32 %v1427_v27, %v1342_v19  ;;  %v422_v32 = vpop.f32.mrb[3].mxu0  ;;  %v625_v25 = vld [vmem:[%s1917_s1 + $0x8] sm:$0xff] }
  0xf5   : > { %v439_v34 = vadd.f32 %v1342_v19, %v438_v30  ;;  %v423_v35 = vadd.f32 %v1342_v19, %v422_v32  ;;  %v628_v32 = vld [vmem:[%s1917_s1 + $0x20] sm:$0xff] }
  0xf6   : > { %v619_v36 = vpack.c.bf16 %v447_v29, %v444_v28  ;;  %v617_v37 = vpack.c.bf16 %v431_v31, %v428_v23  ;;  %v624_v23 = vld [vmem:[%s1917_s1] sm:$0xff] }
  0xf7   : > { %v618_v38 = vpack.c.bf16 %v439_v34, %v436_v33  ;;  %v616_v39 = vpack.c.bf16 %v423_v35, %v420_v26  ;;  %v626_v33 = vld [vmem:[%s1917_s1 + $0x10] sm:$0xff] }
  0xf9   : > { %v1438_v40 = vpop.f32.mrb[4].mxu1 }
  0xfa   : > { %v502_v42 = vpop.f32.mrb[5].mxu1  ;;  %v511_v44 = vadd.f32 %v1438_v40, %v1349_v41 }
  0xfb   : > { %v1439_v43 = vpop.f32.mrb[6].mxu1  ;;  %v503_v47 = vadd.f32 %v1349_v41, %v502_v42  ;;  %v1450_v1 = vpop.f32.mrb[4].mxu0 }
  0xfc   : > { %v514_v45 = vadd.f32 %v1439_v43, %v1349_v41  ;;  %v505_v46 = vpop.f32.mrb[7].mxu1  ;;  %v585_v3 = vpop.f32.mrb[5].mxu0  ;;  %v594_v4 = vadd.f32 %v1450_v1, %v1356_v2 }
  0xfd   : > { %v506_v48 = vadd.f32 %v1349_v41, %v505_v46  ;;  %v1451_v5 = vpop.f32.mrb[6].mxu0  ;;  %v586_v7 = vadd.f32 %v1356_v2, %v585_v3 }
  0xfe   : > { %v621_v49 = vpack.c.bf16 %v514_v45, %v511_v44  ;;  %v588_v6 = vpop.f32.mrb[7].mxu0  ;;  %v597_v8 = vadd.f32 %v1451_v5, %v1356_v2 }
  0xff   : > { %v620_v50 = vpack.c.bf16 %v506_v48, %v503_v47  ;;  %v589_v9 = vadd.f32 %v1356_v2, %v588_v6 }
 0x100   : > { %v684_v62 = vsel %vm632_vm2, %v621_v49, 0  ;;  %v915_v10 = vpack.c.bf16 %v597_v8, %v594_v4  ;;  %v629_v49 = vld [vmem:[%s1917_s1 + $0x28] sm:$0xff] }
 0x101   : > { %v1442_v51 = vpop.f32.mrb[8].mxu1  ;;  %v637_v52 = vsel %vm632_vm2, %v620_v50, 0  ;;  %v914_v11 = vpack.c.bf16 %v589_v9, %v586_v7  ;;  %v630_v50 = vld [vmem:[%s1917_s1 + $0x30] sm:$0xff] }
 0x102   : > { %v527_v53 = vadd.f32 %v1442_v51, %v1349_v41  ;;  %v518_v54 = vpop.f32.mrb[9].mxu1  ;;  %1457 = vmatpush3.bf16.xpose.msra.mxu1 %v637_v52 }
 0x103   : > { %v519_v55 = vadd.f32 %v1349_v41, %v518_v54  ;;  %v1443_v56 = vpop.f32.mrb[10].mxu1  ;;  %1462 = vmatprep.subr.bf16.mxu1 %v1641_v18  ;;  %v1454_v12 = vpop.f32.mrb[8].mxu0  ;;  %v631_v54 = vld [vmem:[%s1917_s1 + $0x38] sm:$0xff] }
 0x104   : > { %v530_v57 = vadd.f32 %v1443_v56, %v1349_v41  ;;  %v521_v58 = vpop.f32.mrb[11].mxu1  ;;  %v1781_v13 = vadd.f32 %v1454_v12, %v1356_v2  ;;  %v601_v14 = vpop.f32.mrb[9].mxu0 }
 0x105   : > { %v522_v59 = vadd.f32 %v1349_v41, %v521_v58  ;;  %v1785_v15 = vadd.f32 %v1356_v2, %v601_v14  ;;  %v1455_v16 = vpop.f32.mrb[10].mxu0 }
 0x106   : > { %v623_v60 = vpack.c.bf16 %v530_v57, %v527_v53  ;;  %v1787_v17 = vadd.f32 %v1455_v16, %v1356_v2  ;;  %v604_v19 = vpop.f32.mrb[11].mxu0 }
 0x107   : > { %v622_v61 = vpack.c.bf16 %v522_v59, %v519_v55  ;;  %v1789_v20 = vadd.f32 %v1356_v2, %v604_v19 }
 0x108   : > { %v778_v0 = vsel %vm632_vm2, %v623_v60, 0  ;;  %v917_v21 = vpack.c.bf16 %v1787_v17, %v1781_v13 }
 0x109   : > { %1459 = vmatmul.mubr.msk.bf16.vlgmr.msra.gmra.mrb[12].mxu1 %vm632_vm2, %v616_v39  ;;  %v731_v63 = vsel %vm632_vm2, %v622_v61, 0  ;;  %v916_v22 = vpack.c.bf16 %v1789_v20, %v1785_v15 }
 0x10a   : > { %1463 = vmatpush3.bf16.xpose.msra.mxu1 %v684_v62  ;;  %1469 = vmatpush3.bf16.xpose.msra.mxu0 %v731_v63 }
 0x10b   : > { %1464 = vmatprep.mubr.msk.bf16.mxu1 %vm1642_vm1, %v1641_v18  ;;  %1474 = vmatprep.subr.bf16.mxu1 %v1641_v18 }
 0x10c   : > { %1480 = vmatprep.subr.bf16.mxu0 %v1641_v18 }
 0x111   : > { %1465 = vmatmul.mubr.msk.bf16.vlgmr.msra.gmra.mrb[16].mxu1 %vm632_vm2, %v617_v37  ;;  %1471 = vmatmul.mubr.msk.bf16.vlgmr.msra.gmra.mrb[12].mxu0 %vm632_vm2, %v618_v38  ;;  %v627_v37 = vld [vmem:[%s1917_s1 + $0x18] sm:$0xff] }
 0x112   : > { %1475 = vmatpush3.bf16.xpose.msra.mxu1 %v778_v0  ;;  %1476 = vmatprep.mubr.msk.bf16.mxu1 %vm1642_vm1, %v1641_v18 }
 0x113   : > { %1486 = vmatprep.subr.bf16.mxu1 %v1641_v18  ;;  %1482 = vmatprep.mubr.msk.bf16.mxu0 %vm1642_vm1, %v1641_v18 }
 0x114   : > { %1481 = vmatpush3.bf16.msra.mxu0 %v914_v11 }
 0x115   : > { %1492 = vmatprep.subr.bf16.mxu0 %v1641_v18 }
 0x119   : > { %1477 = vmatmul.mubr.msk.bf16.vlgmr.msra.gmra.mrb[20].mxu1 %vm632_vm2, %v619_v36 }
 0x11a   : > { %1488 = vmatprep.mubr.msk.bf16.mxu1 %vm1642_vm1, %v1641_v18  ;;  %1487 = vmatpush3.bf16.msra.mxu1 %v915_v10 }
 0x11b   : > { %1498 = vmatprep.subr.bf16.mxu1 %v1641_v18 }
 0x1dc   : > { %v673_v24 = vpop.f32.mrb[12].mxu1 }
 0x1dd   : > { %v674_v26 = vadd.f32 %v673_v24, %v624_v23  ;;  %v1460_v27 = vpop.f32.mrb[13].mxu1 }
 0x1de   : > { %v676_v28 = vpop.f32.mrb[14].mxu1 }
 0x1df   : > { %v822_v29 = vsel %vm821_vm3, %v674_v26, -inf  ;;  %v677_v30 = vadd.f32 %v676_v28, %v625_v25  ;;  %v1461_v31 = vpop.f32.mrb[15].mxu1 }
 0x1e0   : > { %823 = vmax.xlane.f32.xlu0 %v822_v29 }
 0x1e1   : > { %v825_v34 = vsel %vm821_vm3, %v677_v30, -inf }
 0x1e4   : > { %v767_v35 = vpop.f32.mrb[12].mxu0  ;;  %826 = vmax.xlane.f32.xlu0 %v825_v34  ;;  %v720_v36 = vpop.f32.mrb[16].mxu1 }
 0x1e5   : > { %v768_v38 = vadd.f32 %v767_v35, %v628_v32  ;;  %v721_v39 = vadd.f32 %v720_v36, %v626_v33  ;;  %v1466_v40 = vpop.f32.mrb[17].mxu1  ;;  %v1472_v41 = vpop.f32.mrb[13].mxu0 }
 0x1e6   : > { %v723_v42 = vpop.f32.mrb[18].mxu1  ;;  %v770_v43 = vpop.f32.mrb[14].mxu0 }
 0x1e7   : > { %v724_v44 = vadd.f32 %v723_v42, %v627_v37  ;;  %v1467_v45 = vpop.f32.mrb[19].mxu1  ;;  %v1473_v46 = vpop.f32.mrb[15].mxu0  ;;  %v834_v47 = vsel %vm821_vm3, %v768_v38, -inf  ;;  %v828_v48 = vsel %vm821_vm3, %v721_v39, -inf  ;;  %v771_v51 = vadd.f32 %v770_v43, %v629_v49 }
 0x1e8   : > { %835 = vmax.xlane.f32.xlu0 %v834_v47  ;;  %829 = vmax.xlane.f32.xlu1 %v828_v48 }
 0x1e9   : > { %v831_v52 = vsel %vm821_vm3, %v724_v44, -inf  ;;  %v837_v60 = vsel %vm821_vm3, %v771_v51, -inf }
 0x1ec   : > { %832 = vmax.xlane.f32.xlu1 %v831_v52  ;;  %v814_v53 = vpop.f32.mrb[20].mxu1 }
 0x1ed   : > { %v815_v55 = vadd.f32 %v814_v53, %v630_v50  ;;  %v1478_v56 = vpop.f32.mrb[21].mxu1 }
 0x1ee   : > { %v817_v57 = vpop.f32.mrb[22].mxu1 }
 0x1ef   : > { %v818_v58 = vadd.f32 %v817_v57, %v631_v54  ;;  %v1479_v59 = vpop.f32.mrb[23].mxu1  ;;  %v840_v61 = vsel %vm821_vm3, %v815_v55, -inf }
 0x1f0   : > { %838 = vmax.xlane.f32.xlu1 %v837_v60  ;;  %841 = vmax.xlane.f32.xlu0 %v840_v61 }
 0x1f1   : > { %v843_v62 = vsel %vm821_vm3, %v818_v58, -inf }
 0x1f4   : > { %844 = vmax.xlane.f32.xlu1 %v843_v62 }
 0x26d   : > { %v824_v63 = vpop.xlane.xlu0 %823 }
 0x26e   : > { %v846_v0 = vsub.f32 %v674_v26, %v824_v63 }
 0x270   : > { %v854_v1 = vmul.f32 1.442695, %v846_v0 }
 0x271   : > { %v827_v2 = vpop.xlane.xlu0 %826 }
 0x272   : > { %1569 = vpow2.f32 %v854_v1  ;;  %v847_v3 = vsub.f32 %v677_v30, %v827_v2 }
 0x274   : > { %v856_v4 = vmul.f32 1.442695, %v847_v3 }
 0x275   : > { %v836_v5 = vpop.xlane.xlu0 %835  ;;  %v830_v6 = vpop.xlane.xlu1 %829 }
 0x276   : > { %1571 = vpow2.f32 %v856_v4  ;;  %v850_v7 = vsub.f32 %v768_v38, %v836_v5  ;;  %v848_v8 = vsub.f32 %v721_v39, %v830_v6 }
 0x278   : > { %v858_v9 = vmul.f32 1.442695, %v848_v8  ;;  %v862_v10 = vmul.f32 1.442695, %v850_v7  ;;  %v1098_v7 = vld [vmem:[%s318_s7] sm:$0xf] }
 0x279   : > { %v833_v11 = vpop.xlane.xlu1 %832  ;;  %v1113_v13 = vsel %vm1111_vm4, %v1098_v7, 0 }
 0x27a   : > { %v849_v12 = vsub.f32 %v724_v44, %v833_v11  ;;  %1573 = vpow2.f32 %v858_v9 }
 0x27b   : > { %1575 = vpow2.f32 %v862_v10 }
 0x27c   : > { %v1570_v14 = vpop.eup %1569  ;;  %v860_v16 = vmul.f32 1.442695, %v849_v12 }
 0x27d   : > { %v839_v19 = vpop.xlane.xlu1 %838  ;;  %v842_v23 = vpop.xlane.xlu0 %841  ;;  %v870_v24 = vsel %vm821_vm3, %v1570_v14, 0.0 }
 0x27e   : > { %1577 = vpow2.f32 %v860_v16  ;;  %v851_v25 = vsub.f32 %v771_v51, %v839_v19  ;;  %v852_v26 = vsub.f32 %v815_v55, %v842_v23  ;;  %871 = vadd.xlane.f32.xlu0 %v870_v24 }
 0x280   : > { %v1572_v27 = vpop.eup %1571  ;;  %v864_v28 = vmul.f32 1.442695, %v851_v25  ;;  %v866_v29 = vmul.f32 1.442695, %v852_v26 }
 0x281   : > { %v845_v30 = vpop.xlane.xlu1 %844  ;;  %v873_v31 = vsel %vm821_vm3, %v1572_v27, 0.0 }
 0x282   : > { %1579 = vpow2.f32 %v864_v28  ;;  %v853_v32 = vsub.f32 %v818_v58, %v845_v30  ;;  %874 = vadd.xlane.f32.xlu1 %v873_v31 }
 0x283   : > { %1581 = vpow2.f32 %v866_v29 }
 0x284   : > { %v868_v33 = vmul.f32 1.442695, %v853_v32  ;;  %v1574_v34 = vpop.eup %1573 }
 0x285   : > { %v876_v35 = vsel %vm821_vm3, %v1574_v34, 0.0  ;;  %v1576_v36 = vpop.eup %1575 }
 0x286   : > { %1583 = vpow2.f32 %v868_v33  ;;  %877 = vadd.xlane.f32.xlu0 %v876_v35  ;;  %v882_v39 = vsel %vm821_vm3, %v1576_v36, 0.0 }
 0x288   : > { %v1578_v37 = vpop.eup %1577 }
 0x289   : > { %v879_v38 = vsel %vm821_vm3, %v1578_v37, 0.0 }
 0x28a   : > { %880 = vadd.xlane.f32.xlu1 %v879_v38  ;;  %883 = vadd.xlane.f32.xlu0 %v882_v39 }
 0x28c   : > { %v1580_v40 = vpop.eup %1579 }
 0x28d   : > { %v1582_v41 = vpop.eup %1581  ;;  %v885_v42 = vsel %vm821_vm3, %v1580_v40, 0.0 }
 0x28e   : > { %v888_v43 = vsel %vm821_vm3, %v1582_v41, 0.0  ;;  %886 = vadd.xlane.f32.xlu1 %v885_v42 }
 0x28f   : > { %889 = vadd.xlane.f32.xlu0 %v888_v43 }
 0x290   : > { %v1584_v44 = vpop.eup %1583 }
 0x291   : > { %v891_v45 = vsel %vm821_vm3, %v1584_v44, 0.0 }
 0x292   : > { %892 = vadd.xlane.f32.xlu1 %v891_v45 }
 0x30b   : > { %v872_v46 = vpop.xlane.xlu0 %871 }
 0x30c   : > { %1585 = vrcp.f32 %v872_v46 }
 0x30f   : > { %v875_v47 = vpop.xlane.xlu1 %874 }
 0x310   : > { %1587 = vrcp.f32 %v875_v47 }
 0x313   : > { %v878_v48 = vpop.xlane.xlu0 %877 }
 0x314   : > { %1589 = vrcp.f32 %v878_v48 }
 0x316   : > { %v1586_v50 = vpop.eup %1585 }
 0x317   : > { %v881_v49 = vpop.xlane.xlu1 %880  ;;  %v884_v51 = vpop.xlane.xlu0 %883  ;;  %v902_v53 = vmul.f32 %v1586_v50, %v1570_v14 }
 0x318   : > { %1591 = vrcp.f32 %v881_v49 }
 0x319   : > { %1593 = vrcp.f32 %v884_v51 }
 0x31a   : > { %v1588_v52 = vpop.eup %1587 }
 0x31b   : > { %v903_v54 = vmul.f32 %v1588_v52, %v1572_v27  ;;  %v887_v55 = vpop.xlane.xlu1 %886 }
 0x31c   : > { %v890_v56 = vpop.xlane.xlu0 %889  ;;  %1595 = vrcp.f32 %v887_v55 }
 0x31d   : > { %v910_v57 = vpack.c.bf16 %v903_v54, %v902_v53  ;;  %1597 = vrcp.f32 %v890_v56 }
 0x31e   : > { %v1590_v59 = vpop.eup %1589 }
 0x31f   : > { %1483 = vmatmul.mubr.msk.bf16.vlgmr.msra.gmra.mrb[16].mxu0 %vm821_vm3, %v910_v57  ;;  %v893_v58 = vpop.xlane.xlu1 %892  ;;  %v904_v61 = vmul.f32 %v1590_v59, %v1574_v34 }
 0x320   : > { %1493 = vmatpush3.bf16.msra.mxu0 %v916_v22  ;;  %1599 = vrcp.f32 %v893_v58  ;;  %1494 = vmatprep.mubr.msk.bf16.mxu0 %vm1642_vm1, %v1641_v18 }
 0x321   : > { %1518 = vmatprep.subr.msk.bf16.mxu0 %vm1111_vm4, %v1098_v7 }
 0x322   : > { %v1592_v60 = vpop.eup %1591 }
 0x323   : > { %v905_v62 = vmul.f32 %v1592_v60, %v1578_v37  ;;  %v1594_v63 = vpop.eup %1593 }
 0x324   : > { %v906_v2 = vmul.f32 %v1594_v63, %v1576_v36 }
 0x325   : > { %v911_v0 = vpack.c.bf16 %v905_v62, %v904_v61 }
 0x326   : > { %v1596_v1 = vpop.eup %1595 }
 0x327   : > { %v907_v3 = vmul.f32 %v1596_v1, %v1580_v40  ;;  %1489 = vmatmul.mubr.msk.bf16.vlgmr.msra.gmra.mrb[24].mxu1 %vm821_vm3, %v911_v0  ;;  %v1598_v4 = vpop.eup %1597  ;;  %v1376_v40 = vld [vmem:[%s1921_s5] ss:$0 sm:$0xff] (!%p1375_p7) }
 0x328   : > { %1499 = vmatpush3.bf16.msra.mxu1 %v917_v21  ;;  %1500 = vmatprep.mubr.msk.bf16.mxu1 %vm1642_vm1, %v1641_v18  ;;  %v908_v22 = vmul.f32 %v1598_v4, %v1582_v41  ;;  %1191 = vst.msk [vmem:[%s1727_s16] sm:$0xff] (!%p1375_p7), %vm372_vm0, %v1376_v40  ;;  %1192 = vst.msk [vmem:[%s1727_s16 + $0x8] sm:$0xff] (!%p1375_p7), %vm372_vm0, %v1376_v40 }
 0x329   : > { %v912_v15 = vpack.c.bf16 %v907_v3, %v906_v2  ;;  %1193 = vst.msk [vmem:[%s1727_s16 + $0x10] sm:$0xff] (!%p1375_p7), %vm372_vm0, %v1376_v40  ;;  %1194 = vst.msk [vmem:[%s1727_s16 + $0x18] sm:$0xff] (!%p1375_p7), %vm372_vm0, %v1376_v40 }
 0x32a   : > { %v1600_v20 = vpop.eup %1599  ;;  %1195 = vst.msk [vmem:[%s1727_s16 + $0x20] sm:$0xff] (!%p1375_p7), %vm372_vm0, %v1376_v40  ;;  %1196 = vst.msk [vmem:[%s1727_s16 + $0x28] sm:$0xff] (!%p1375_p7), %vm372_vm0, %v1376_v40 }
 0x32b   : > { %v909_v5 = vmul.f32 %v1600_v20, %v1584_v44  ;;  %1495 = vmatmul.mubr.msk.bf16.vlgmr.msra.gmra.mrb[20].mxu0 %vm821_vm3, %v912_v15  ;;  %1197 = vst.msk [vmem:[%s1727_s16 + $0x30] sm:$0xff] (!%p1375_p7), %vm372_vm0, %v1376_v40  ;;  %1198 = vst.msk [vmem:[%s1727_s16 + $0x38] sm:$0xff] (!%p1375_p7), %vm372_vm0, %v1376_v40 }
 0x32c   : > { %1505 = vmatpush3.bf16.msra.mxu0 %v1113_v13 }
 0x32d   : > { %v913_v6 = vpack.c.bf16 %v909_v5, %v908_v22 }
 0x32f   : > { %1501 = vmatmul.mubr.msk.bf16.vlgmr.msra.gmra.mrb[28].mxu1 %vm821_vm3, %v913_v6 }
 0x3f2   : > { %v955_v18 = vpop.f32.mrb[16].mxu0 }
 0x3f3   : > { %v1484_v17 = vpop.f32.mrb[17].mxu0 }
 0x3f4   : > { %v958_v21 = vpop.f32.mrb[18].mxu0 }
 0x3f5   : > { %v1094_v8 = vpack.c.bf16 %v958_v21, %v955_v18  ;;  %v1485_v9 = vpop.f32.mrb[19].mxu0 }
 0x3f7   : > { %1506 = vmatprep.mubr.msk.bf16.mxu0 %vm632_vm2, %v1094_v8 }
 0x3fa   : > { %v999_v10 = vpop.f32.mrb[24].mxu1 }
 0x3fb   : > { %v1490_v11 = vpop.f32.mrb[25].mxu1 }
 0x3fc   : > { %v1002_v12 = vpop.f32.mrb[26].mxu1 }
 0x3fd   : > { %v1095_v14 = vpack.c.bf16 %v1002_v12, %v999_v10  ;;  %v1491_v16 = vpop.f32.mrb[27].mxu1 }
 0x3fe   : > { %v1043_v19 = vpop.f32.mrb[20].mxu0 }
 0x3ff   : > { %v1496_v23 = vpop.f32.mrb[21].mxu0  ;;  %1507 = vmatmul.mubr.msk.bf16.vlgmr.msra.gmra.mrb[24].mxu0 %vm632_vm2, %v1095_v14 }
 0x400   : > { %v1046_v24 = vpop.f32.mrb[22].mxu0 }
 0x401   : > { %v1096_v25 = vpack.c.bf16 %v1046_v24, %v1043_v19  ;;  %v1497_v26 = vpop.f32.mrb[23].mxu0 }
 0x402   : > { %v1087_v27 = vpop.f32.mrb[28].mxu1 }
 0x403   : > { %v1502_v28 = vpop.f32.mrb[29].mxu1  ;;  %1510 = vmatprep.mubr.msk.bf16.mxu0 %vm632_vm2, %v1096_v25 }
 0x404   : > { %v1090_v29 = vpop.f32.mrb[30].mxu1 }
 0x405   : > { %v1097_v30 = vpack.c.bf16 %v1090_v29, %v1087_v27  ;;  %v1503_v31 = vpop.f32.mrb[31].mxu1 }
 0x407   : > { %1511 = vmatmul.mubr.msk.bf16.gmra.mrb[28].mxu0 %vm632_vm2, %v1097_v30 }
 0x4d2   : > { %v1508_v32 = vpop.f32.mrb[24].mxu0 }
 0x4d3   : > { %v1149_v33 = vpop.f32.mrb[25].mxu0 }
 0x4d4   : > { %v1509_v34 = vpop.f32.mrb[26].mxu0 }
 0x4d5   : > { %v1152_v35 = vpop.f32.mrb[27].mxu0 }
 0x4d7   : > { %1183 = sbr.rel (%p1375_p7) target bundleno = 1246 (0x4de), region = 48 }
 0x4da   : > { %v1512_v36 = vpop.f32.mrb[28].mxu0 }
 0x4db   : > { %v1165_v37 = vpop.f32.mrb[29].mxu0 }
 0x4dc   : > { %v1513_v38 = vpop.f32.mrb[30].mxu0 }
 0x4dd   : > { %v1168_v39 = vpop.f32.mrb[31].mxu0 }
 0x4de PF: > { %v1199_v41 = vld [vmem:[%s1727_s16] sm:$0xff]  ;;  %v1201_v42 = vld [vmem:[%s1727_s16 + $0x10] sm:$0xff]  ;;  %v1200_v47 = vld [vmem:[%s1727_s16 + $0x8] sm:$0xff] }
 0x4df   : > { %v1203_v43 = vld [vmem:[%s1727_s16 + $0x20] sm:$0xff]  ;;  %v1205_v44 = vld [vmem:[%s1727_s16 + $0x30] sm:$0xff]  ;;  %v1207_v45 = vadd.f32 %v1199_v41, %v1149_v33  ;;  %v1209_v46 = vadd.f32 %v1508_v32, %v1201_v42  ;;  %v1202_v48 = vld [vmem:[%s1727_s16 + $0x18] sm:$0xff]  ;;  %v1208_v52 = vadd.f32 %v1200_v47, %v1152_v35 }
 0x4e0   : > { %v1211_v49 = vadd.f32 %v1203_v43, %v1165_v37  ;;  %v1204_v50 = vld [vmem:[%s1727_s16 + $0x28] sm:$0xff]  ;;  %v1206_v51 = vld [vmem:[%s1727_s16 + $0x38] sm:$0xff]  ;;  %v1210_v53 = vadd.f32 %v1509_v34, %v1202_v48  ;;  %v1213_v54 = vadd.f32 %v1512_v36, %v1205_v44 }
 0x4e1   : > { %1215 = vst.msk [vmem:[%s1727_s16] sm:$0xff] %vm372_vm0, %v1207_v45  ;;  %v1212_v55 = vadd.f32 %v1204_v50, %v1168_v39  ;;  %v1214_v56 = vadd.f32 %v1513_v38, %v1206_v51  ;;  %1217 = vst.msk [vmem:[%s1727_s16 + $0x10] sm:$0xff] %vm372_vm0, %v1209_v46 }
 0x4e2   : > { %1216 = vst.msk [vmem:[%s1727_s16 + $0x8] sm:$0xff] %vm372_vm0, %v1208_v52  ;;  %1218 = vst.msk [vmem:[%s1727_s16 + $0x18] sm:$0xff] %vm372_vm0, %v1210_v53 }
 0x4e3   : > { %1219 = vst.msk [vmem:[%s1727_s16 + $0x20] sm:$0xff] %vm372_vm0, %v1211_v49  ;;  %1220 = vst.msk [vmem:[%s1727_s16 + $0x28] sm:$0xff] %vm372_vm0, %v1212_v55 }
 0x4e4   : > { %1221 = vst.msk [vmem:[%s1727_s16 + $0x30] sm:$0xff] %vm372_vm0, %v1213_v54  ;;  %1222 = vst.msk [vmem:[%s1727_s16 + $0x38] sm:$0xff] %vm372_vm0, %v1214_v56 }
 0x4e5 PF: > { %s16_s25 = sadd.s32 1, %s1639_s25   ;;  %s1923_s21 = smov %s1631_s23 }
 0x4e6   : > { %p13_p8 = scmp.ge.s32.totalorder %s16_s25, 10   ;;  %s1924_s22 = smov %s1635_s24 }
 0x4e7   : > { %s1925_s23 = smov %s1928_s26  ;;  %s1926_s24 = smov %s1932_s27 }
 0x4e8   :  { %15 = sbr.rel (!%p13_p8) target bundleno = 3 (0x3), region = 87 }

</bundles_post_ra>
